<compile_context>
chip_gen: v5e
topology: v5e:2x2
jax: 0.10.0
libtpu: 0.0.40
codegen_flags: <defaults>
</compile_context>

<pallas_src>
import math
import functools

import jax
import jax.numpy as jnp
from jax import lax
from jax.experimental import pallas as pl
from jax.experimental.pallas import tpu as pltpu


def _sinkhorn_kernel(xs_ref, ys_ref, xw_ref, yw_ref, out_ref,
                     nCe_ref, K_ref, *,
                     eps, logZ, scale_factor, n_iter, lamda1, lamda2,
                     atol, rtol, thresh, check_every, use_mxu):
    xs = xs_ref[...]            # (N, d) float32
    ys = ys_ref[...]            # (M, d) float32
    xw = xw_ref[...]            # (N, 1) float32   (strictly positive)
    yw = yw_ref[...]            # (1, M) float32   (strictly positive)

    d = xs.shape[1]
    inv_eps = 1.0 / eps

    # ---- loop-invariant slab: negCe = -C/eps - logZ + log(xw) + log(yw) ----
    # C = cdist(x, y, p=2)^2 / (2 * scale_factor^2)
    x2 = jnp.sum(xs * xs, axis=1, keepdims=True)                        # (N,1)
    ones_row = jnp.ones((1, d), jnp.float32)
    y2 = lax.dot_general(ones_row, ys * ys, (((1,), (1,)), ((), ())),
                         preferred_element_type=jnp.float32)            # (1,M)
    xy = lax.dot_general(xs, ys, (((1,), (1,)), ((), ())),
                         preferred_element_type=jnp.float32)            # (N,M)
    sq = jnp.maximum(x2 + y2 - 2.0 * xy, 0.0)
    lxw = jnp.log(xw)                                                   # (N,1)
    lyw = jnp.log(yw)                                                   # (1,M)
    neg_c_scale = -1.0 / (2.0 * scale_factor ** 2 * eps)
    negCe = sq * neg_c_scale - logZ + lxw + lyw                         # (N,M)
    nCe_ref[...] = negCe

    # Gibbs kernel for a = b = 0:  K = exp(negCe - a/eps - b/eps)
    K0 = jnp.exp(negCe)
    K_ref[...] = K0

    balanced = (lamda1 is None) and (lamda2 is None)

    # Matvec helpers: tiny slabs stay on the VPU; large slabs use the MXU
    # (which is otherwise idle during the Sinkhorn loop).
    if use_mxu:
        def Kv(K, v_row):       # (N,M) x (1,M) -> (N,1)
            return lax.dot_general(K, v_row, (((1,), (1,)), ((), ())),
                                   preferred_element_type=jnp.float32)

        def Ktu(K, u_col):      # (N,1) x (N,M) -> (1,M)
            return lax.dot_general(u_col, K, (((0,), (0,)), ((), ())),
                                   preferred_element_type=jnp.float32)
    else:
        def Kv(K, v_row):
            return jnp.sum(K * v_row, axis=1, keepdims=True)

        def Ktu(K, u_col):
            return jnp.sum(K * u_col, axis=0, keepdims=True)

    # proxdiv operators; the argument-passing quirk of the reference is kept
    # exactly (F2 chosen by lamda2 but called with lamda1, and vice versa).
    def proxdiv_bal(p, s, uu, lam):
        return p / s

    def proxdiv_unb(p, s, uu, lam):
        return (p / s) ** (lam / (lam + eps)) * jnp.exp(uu / (lam + eps))

    proxF1 = proxdiv_bal if lamda1 is None else proxdiv_unb
    proxF2 = proxdiv_bal if lamda2 is None else proxdiv_unb

    u0 = jnp.ones_like(xw)      # (N,1)
    v0 = jnp.ones_like(yw)      # (1,M)
    a0 = jnp.zeros_like(xw)
    b0 = jnp.zeros_like(yw)

    blk = check_every           # sweeps per convergence / absorption check

    def cond_fn(st):
        i, conv = st[0], st[1]
        return jnp.logical_and(i < n_iter, jnp.logical_not(conv))

    if balanced:
        # err < atol  or  err/max|yw| < rtol   <=>   err < max(atol, rtol*max|yw|)
        tol = jnp.maximum(jnp.asarray(atol, jnp.float32),
                          jnp.asarray(rtol, jnp.float32) * jnp.max(jnp.abs(yw)))
        s2_init = jnp.sum(K0, axis=0, keepdims=True)      # K0^T @ 1   (1,M)

        def body_fn(st):
            i, _, u, v, a, b, s2 = st                     # s2 == K^T @ u
            K = K_ref[...]
            # `blk` full sweeps with no scalar sync in between.
            for _ in range(blk):
                v = yw / s2
                s1 = Kv(K, v)                             # K @ v      (N,1)
                u = xw / s1
                s2 = Ktu(K, u)                            # K^T @ u    (1,M)

            err = jnp.max(jnp.abs(v * s2 - yw))
            conv = err < tol

            # absorption test folded into the blocked cadence
            big = jnp.maximum(jnp.max(jnp.abs(u)), jnp.max(jnp.abs(v))) > thresh
            do_abs = jnp.logical_and(jnp.logical_not(conv), big)

            a1 = jnp.where(do_abs, a - eps * jnp.log(u), a)
            b1 = jnp.where(do_abs, b - eps * jnp.log(v), b)
            u2 = jnp.where(do_abs, jnp.ones_like(u), u)
            v2 = jnp.where(do_abs, jnp.ones_like(v), v)
            # next block's K^T u:  K_new^T @ 1 == v * (K^T @ u) exactly
            s2n = jnp.where(do_abs, v * s2, s2)

            @pl.when(do_abs)
            def _():
                K_ref[...] = jnp.exp(nCe_ref[...] - a1 * inv_eps - b1 * inv_eps)

            return (i + blk, conv, u2, v2, a1, b1, s2n)

        init = (jnp.zeros((), jnp.int32), jnp.zeros((), jnp.bool_),
                u0, v0, a0, b0, s2_init)
        _, _, u, v, a, b, _ = lax.while_loop(cond_fn, body_fn, init)
    else:
        # TODO(synk): the PyTorch reference aliases u_prev to u (in-place
        # copy_), making its unbalanced convergence test read err == 0; here
        # u_prev is a true snapshot of the previous sweep instead.
        def body_fn(st):
            i, _, u, v, a, b = st
            K = K_ref[...]
            u_prev = u
            for _ in range(blk):
                u_prev = u
                s2 = Ktu(K, u)                            # K^T @ u    (1,M)
                v = proxF2(yw, s2, b, lamda1)
                s1 = Kv(K, v)                             # K @ v      (N,1)
                u = proxF1(xw, s1, a, lamda2)

            err = jnp.max(jnp.abs(u - u_prev))
            conv = jnp.logical_or(err < atol,
                                  err < rtol * jnp.max(jnp.abs(u)))

            big = jnp.maximum(jnp.max(jnp.abs(u)), jnp.max(jnp.abs(v))) > thresh
            do_abs = jnp.logical_and(jnp.logical_not(conv), big)
            a1 = jnp.where(do_abs, a - eps * jnp.log(u), a)
            b1 = jnp.where(do_abs, b - eps * jnp.log(v), b)
            u2 = jnp.where(do_abs, jnp.ones_like(u), u)
            v2 = jnp.where(do_abs, jnp.ones_like(v), v)

            @pl.when(do_abs)
            def _():
                K_ref[...] = jnp.exp(nCe_ref[...] - a1 * inv_eps - b1 * inv_eps)

            return (i + blk, conv, u2, v2, a1, b1)

        init = (jnp.zeros((), jnp.int32), jnp.zeros((), jnp.bool_),
                u0, v0, a0, b0)
        _, _, u, v, a, b = lax.while_loop(cond_fn, body_fn, init)

    # ---- dual objective (K_ref is dead after the loop; reuse it as the ----
    # ---- epilogue slab so peak VMEM stays at ~2 resident (N,M) slabs) -----
    negCe = nCe_ref[...]
    f = -eps * jnp.log(u) + a          # (N,1)
    g = -eps * jnp.log(v) + b          # (1,M)

    # z1 = (-C - g)/eps + log(yw) = negCe + (logZ - log(xw)) - g/eps
    K_ref[...] = negCe + (logZ - lxw) - g * inv_eps
    z1 = K_ref[...]
    m1 = jnp.max(z1, axis=1, keepdims=True)
    f_cts = eps * (m1 + jnp.log(jnp.sum(jnp.exp(z1 - m1), axis=1,
                                        keepdims=True))) - eps * logZ   # (N,1)

    # z2 = (-C - f)/eps + log(xw) = negCe + (logZ - log(yw)) - f/eps
    K_ref[...] = negCe + (logZ - lyw) - f * inv_eps
    z2 = K_ref[...]
    m2 = jnp.max(z2, axis=0, keepdims=True)
    g_cts = eps * (m2 + jnp.log(jnp.sum(jnp.exp(z2 - m2), axis=0,
                                        keepdims=True))) - eps * logZ   # (1,M)

    if lamda1 is None:
        f1 = jnp.sum(f_cts * xw)
    else:
        f1 = lamda1 * jnp.sum(xw * (jnp.exp(f_cts / lamda1) - 1.0))
    if lamda2 is None:
        f2 = jnp.sum(g_cts * yw)
    else:
        f2 = lamda2 * jnp.sum(yw * (jnp.exp(g_cts / lamda2) - 1.0))

    # plan = exp(-(C + f_cts + g_cts)/eps - logZ) * xw * yw
    #      = exp(negCe - f_cts/eps - g_cts/eps)
    K_ref[...] = jnp.exp(negCe - f_cts * inv_eps - g_cts * inv_eps)
    plan_sum = jnp.sum(K_ref[...])

    loss = -f1 - f2 - eps * plan_sum
    # lane-dense scalar broadcast; wrapper reads [b, 0, 0]
    out_ref[...] = jnp.full(out_ref.shape, loss, dtype=jnp.float32)


def sinkhorn_loss(x_w, x_spt, y_w, y_spt, *, eps, n_iter, scale_factor,
                  lamda1=None, lamda2=None, atol=1e-4, rtol=1e-4,
                  thresh=100.0, check_every=2):
    """Forward pass of SinkhornLoss (dual objective) as one Pallas call.

    Accepts a single problem (x_spt: (N, d)) or a batch (x_spt: (B, N, d)).
    The batch axis becomes a "parallel" grid axis (one problem per grid step;
    uses both TensorCores on v7x).  Weights must be strictly positive.
    `check_every` = Sinkhorn sweeps per convergence/absorption check (may run
    up to check_every-1 extra sweeps past convergence; fixed-point refinement).
    """
    x_spt = jnp.asarray(x_spt, jnp.float32)
    y_spt = jnp.asarray(y_spt, jnp.float32)
    x_w = jnp.asarray(x_w, jnp.float32)
    y_w = jnp.asarray(y_w, jnp.float32)

    single = (x_spt.ndim == 2)
    if single:
        x_spt, y_spt = x_spt[None], y_spt[None]
        x_w, y_w = x_w.reshape(1, -1), y_w.reshape(1, -1)

    B, N, d = x_spt.shape
    M = y_spt.shape[1]
    logZ = math.log((2.0 * math.pi * eps) ** (d / 2.0))

    # Tiny slabs stay on the VPU; large slabs run the two per-sweep matvecs
    # on the (otherwise idle) MXU.
    use_mxu = (N * M) >= (128 * 128)

    blk = max(1, min(int(check_every), int(n_iter) if int(n_iter) > 0 else 1))

    kernel = functools.partial(
        _sinkhorn_kernel,
        eps=float(eps), logZ=float(logZ), scale_factor=float(scale_factor),
        n_iter=int(n_iter), lamda1=lamda1, lamda2=lamda2,
        atol=float(atol), rtol=float(rtol), thresh=float(thresh),
        check_every=blk, use_mxu=use_mxu)

    # Generation-aware VMEM budget: 2 resident (N,M) scratch slabs, a few
    # compiler (N,M) temporaries and lane-padded per-problem input blocks.
    # Fail loudly if this chip cannot fit the problem instead of silently
    # clamping the limit and OOM-ing at compile time.
    try:
        vmem_cap = int(pltpu.get_tpu_info().vmem_capacity_bytes)
    except Exception:                                   # e.g. interpret mode
        vmem_cap = 64 * 1024 * 1024
    usable = vmem_cap - 8 * 1024 * 1024                 # Mosaic headroom
    slab = 4 * N * M
    need = 8 * slab + 4 * 4 * (N + M) * max(d, 128) + (2 << 20)
    if need > usable:
        raise ValueError(
            f"Sinkhorn problem N={N}, M={M} needs ~{need >> 20} MiB VMEM but "
            f"only ~{usable >> 20} MiB is usable on this TPU; reduce N*M or "
            f"tile the cost matrix.")
    vmem_limit = int(min(max(need, 32 * 1024 * 1024), usable))

    out = pl.pallas_call(
        kernel,
        out_shape=jax.ShapeDtypeStruct((B, 8, 128), jnp.float32),
        grid=(B,),
        in_specs=[
            pl.BlockSpec((None, N, d), lambda b: (b, 0, 0)),   # x_spt
            pl.BlockSpec((None, M, d), lambda b: (b, 0, 0)),   # y_spt
            pl.BlockSpec((None, N, 1), lambda b: (b, 0, 0)),   # x_w column
            pl.BlockSpec((None, 1, M), lambda b: (b, 0, 0)),   # y_w row
        ],
        out_specs=pl.BlockSpec((None, 8, 128), lambda b: (b, 0, 0)),
        scratch_shapes=[pltpu.VMEM((N, M), jnp.float32),   # negCe (invariant)
                        pltpu.VMEM((N, M), jnp.float32)],  # K / epilogue slab
        compiler_params=pltpu.CompilerParams(
            dimension_semantics=("parallel",),
            vmem_limit_bytes=vmem_limit),
    )(x_spt, y_spt,
      x_w.reshape(B, N, 1), y_w.reshape(B, 1, M))

    loss = out[:, 0, 0]
    return loss[0] if single else loss


if __name__ == "__main__":
    key = jax.random.PRNGKey(0)
    k1, k2, k3, k4 = jax.random.split(key, 4)

    B, N, M, d = 2, 64, 48, 8
    x_spt = jax.random.normal(k1, (B, N, d), jnp.float32)
    y_spt = jax.random.normal(k2, (B, M, d), jnp.float32) + 0.2
    x_w = jax.random.uniform(k3, (B, N), jnp.float32, minval=0.5, maxval=1.5)
    x_w = x_w / jnp.sum(x_w, axis=1, keepdims=True)
    y_w = jax.random.uniform(k4, (B, M), jnp.float32, minval=0.5, maxval=1.5)
    y_w = y_w / jnp.sum(y_w, axis=1, keepdims=True)

    # balanced OT (lamda1 = lamda2 = None), matching the module defaults;
    # two independent problems run on one "parallel" grid axis.
    loss = sinkhorn_loss(x_w, x_spt, y_w, y_spt,
                         eps=1.0, n_iter=50, scale_factor=2.0)
    loss = jax.block_until_ready(loss)
    assert loss.shape == (B,), f"bad output shape: {loss.shape}"
    assert bool(jnp.all(jnp.isfinite(loss))), f"non-finite loss: {loss}"
    print("KERNEL_OK")
</pallas_src>

<mosaic_0001>
module attributes {stable_mosaic.version = 11 : i64} {
  func.func @_sinkhorn_kernel(%arg0: i32, %arg1: memref<1x64x8xf32, #tpu.memory_space<vmem>>, %arg2: memref<1x48x8xf32, #tpu.memory_space<vmem>>, %arg3: memref<1x64x1xf32, #tpu.memory_space<vmem>>, %arg4: memref<1x1x48xf32, #tpu.memory_space<vmem>>, %arg5: memref<1x8x128xf32, #tpu.memory_space<vmem>>, %arg6: memref<64x48xf32, #tpu.memory_space<vmem>>, %arg7: memref<64x48xf32, #tpu.memory_space<vmem>>) attributes {dimension_semantics = [#tpu.dimension_semantics<parallel>], iteration_bounds = array<i64: 2>, scalar_prefetch = 0 : i64, scratch_operands = 2 : i64, tpu.core_type = #tpu.core_type<tc>, window_params = [{transform_indices = @transform_0, window_bounds = array<i64: 1, 64, 8>}, {transform_indices = @transform_1, window_bounds = array<i64: 1, 48, 8>}, {transform_indices = @transform_2, window_bounds = array<i64: 1, 64, 1>}, {transform_indices = @transform_3, window_bounds = array<i64: 1, 1, 48>}, {transform_indices = @transform_4, window_bounds = array<i64: 1, 8, 128>}]} {
    %c0 = arith.constant 0 : index
    %c0_0 = arith.constant 0 : index
    %c0_1 = arith.constant 0 : index
    %0 = vector.load %arg1[%c0, %c0_0, %c0_1] : memref<1x64x8xf32, #tpu.memory_space<vmem>>, vector<1x64x8xf32>
    %1 = vector.shape_cast %0 : vector<1x64x8xf32> to vector<64x8xf32>
    %c0_2 = arith.constant 0 : index
    %c0_3 = arith.constant 0 : index
    %c0_4 = arith.constant 0 : index
    %2 = vector.load %arg2[%c0_2, %c0_3, %c0_4] : memref<1x48x8xf32, #tpu.memory_space<vmem>>, vector<1x48x8xf32>
    %3 = vector.shape_cast %2 : vector<1x48x8xf32> to vector<48x8xf32>
    %c0_5 = arith.constant 0 : index
    %c0_6 = arith.constant 0 : index
    %c0_7 = arith.constant 0 : index
    %4 = vector.load %arg3[%c0_5, %c0_6, %c0_7] : memref<1x64x1xf32, #tpu.memory_space<vmem>>, vector<1x64x1xf32>
    %5 = vector.shape_cast %4 : vector<1x64x1xf32> to vector<64x1xf32>
    %c0_8 = arith.constant 0 : index
    %c0_9 = arith.constant 0 : index
    %c0_10 = arith.constant 0 : index
    %6 = vector.load %arg4[%c0_8, %c0_9, %c0_10] : memref<1x1x48xf32, #tpu.memory_space<vmem>>, vector<1x1x48xf32>
    %7 = vector.shape_cast %6 : vector<1x1x48xf32> to vector<1x48xf32>
    %8 = arith.mulf %1, %1 : vector<64x8xf32>
    %cst = arith.constant dense<0.000000e+00> : vector<64xf32>
    %9 = vector.multi_reduction <add>, %8, %cst [1] : vector<64x8xf32> to vector<64xf32>
    %10 = vector.shape_cast %9 : vector<64xf32> to vector<64x1xf32>
    %cst_11 = arith.constant 1.000000e+00 : f32
    %11 = vector.broadcast %cst_11 : f32 to vector<1x8xf32>
    %12 = arith.mulf %3, %3 : vector<48x8xf32>
    %cst_12 = arith.constant dense<0.000000e+00> : vector<1x48xf32>
    %13 = tpu.matmul %11, %12, %cst_12 {dimension_numbers = #tpu.dot_dimension_numbers<[1], [1], [0], [0], [0, 0, 1, 0], [], []>} : vector<1x8xf32>, vector<48x8xf32>, vector<1x48xf32> -> vector<1x48xf32>
    %cst_13 = arith.constant dense<0.000000e+00> : vector<64x48xf32>
    %14 = tpu.matmul %1, %3, %cst_13 {dimension_numbers = #tpu.dot_dimension_numbers<[1], [1], [0], [0], [0, 0, 1, 0], [], []>} : vector<64x8xf32>, vector<48x8xf32>, vector<64x48xf32> -> vector<64x48xf32>
    %15 = vector.broadcast %10 : vector<64x1xf32> to vector<64x48xf32>
    %16 = vector.broadcast %13 : vector<1x48xf32> to vector<64x48xf32>
    %17 = arith.addf %15, %16 : vector<64x48xf32>
    %cst_14 = arith.constant 2.000000e+00 : f32
    %18 = vector.broadcast %cst_14 : f32 to vector<64x48xf32>
    %19 = arith.mulf %18, %14 : vector<64x48xf32>
    %20 = arith.subf %17, %19 : vector<64x48xf32>
    %cst_15 = arith.constant 0.000000e+00 : f32
    %21 = vector.broadcast %cst_15 : f32 to vector<64x48xf32>
    %22 = arith.maximumf %20, %21 : vector<64x48xf32>
    %23 = math.log %5 : vector<64x1xf32>
    %24 = math.log %7 : vector<1x48xf32>
    %cst_16 = arith.constant -1.250000e-01 : f32
    %25 = vector.broadcast %cst_16 : f32 to vector<64x48xf32>
    %26 = arith.mulf %22, %25 : vector<64x48xf32>
    %cst_17 = arith.constant 7.35150814 : f32
    %27 = vector.broadcast %cst_17 : f32 to vector<64x48xf32>
    %28 = arith.subf %26, %27 : vector<64x48xf32>
    %29 = vector.broadcast %23 : vector<64x1xf32> to vector<64x48xf32>
    %30 = arith.addf %28, %29 : vector<64x48xf32>
    %31 = vector.broadcast %24 : vector<1x48xf32> to vector<64x48xf32>
    %32 = arith.addf %30, %31 : vector<64x48xf32>
    %c0_18 = arith.constant 0 : index
    %c0_19 = arith.constant 0 : index
    %33 = vector.load %arg6[%c0_18, %c0_19] : memref<64x48xf32, #tpu.memory_space<vmem>>, vector<64x48xf32>
    tpu.vector_store %arg6[%c0_18, %c0_19], %32 {strides = array<i32>} : memref<64x48xf32, #tpu.memory_space<vmem>>, vector<64x48xf32>,
    %34 = math.exp %32 : vector<64x48xf32>
    %c0_20 = arith.constant 0 : index
    %c0_21 = arith.constant 0 : index
    %35 = vector.load %arg7[%c0_20, %c0_21] : memref<64x48xf32, #tpu.memory_space<vmem>>, vector<64x48xf32>
    tpu.vector_store %arg7[%c0_20, %c0_21], %34 {strides = array<i32>} : memref<64x48xf32, #tpu.memory_space<vmem>>, vector<64x48xf32>,
    %cst_22 = arith.constant 1.000000e+00 : f32
    %36 = vector.broadcast %cst_22 : f32 to vector<64x1xf32>
    %cst_23 = arith.constant 1.000000e+00 : f32
    %37 = vector.broadcast %cst_23 : f32 to vector<1x48xf32>
    %cst_24 = arith.constant 0.000000e+00 : f32
    %38 = vector.broadcast %cst_24 : f32 to vector<64x1xf32>
    %cst_25 = arith.constant 0.000000e+00 : f32
    %39 = vector.broadcast %cst_25 : f32 to vector<1x48xf32>
    %40 = math.absf %7 : vector<1x48xf32>
    %41 = vector.shape_cast %40 : vector<1x48xf32> to vector<1x1x48xf32>
    %cst_26 = arith.constant dense<0xFF800000> : vector<1xf32>
    %42 = vector.multi_reduction <maximumf>, %41, %cst_26 [1, 2] : vector<1x1x48xf32> to vector<1xf32>
    %43 = vector.shape_cast %42 : vector<1xf32> to vector<1x1x1xf32>
    %44 = vector.extract %43[0, 0, 0] : f32 from vector<1x1x1xf32>
    %cst_27 = arith.constant 9.99999974E-5 : f32
    %45 = arith.mulf %cst_27, %44 : f32
    %cst_28 = arith.constant 9.99999974E-5 : f32
    %46 = arith.maximumf %cst_28, %45 : f32
    %cst_29 = arith.constant dense<0.000000e+00> : vector<48xf32>
    %47 = vector.multi_reduction <add>, %34, %cst_29 [0] : vector<64x48xf32> to vector<48xf32>
    %48 = vector.shape_cast %47 : vector<48xf32> to vector<1x48xf32>
    %c0_i32 = arith.constant 0 : i32
    %false = arith.constant false
    %49:7 = scf.while (%arg8 = %c0_i32, %arg9 = %false, %arg10 = %36, %arg11 = %37, %arg12 = %38, %arg13 = %39, %arg14 = %48) : (i32, i1, vector<64x1xf32>, vector<1x48xf32>, vector<64x1xf32>, vector<1x48xf32>, vector<1x48xf32>) -> (i32, i1, vector<64x1xf32>, vector<1x48xf32>, vector<64x1xf32>, vector<1x48xf32>, vector<1x48xf32>) {
      %c50_i32 = arith.constant 50 : i32
      %138 = arith.cmpi slt, %arg8, %c50_i32 : i32
      %true = arith.constant true
      %139 = arith.xori %arg9, %true : i1
      %140 = arith.andi %138, %139 : i1
      scf.condition(%140) %arg8, %arg9, %arg10, %arg11, %arg12, %arg13, %arg14 : i32, i1, vector<64x1xf32>, vector<1x48xf32>, vector<64x1xf32>, vector<1x48xf32>, vector<1x48xf32>
    } do {
    ^bb0(%arg8: i32, %arg9: i1, %arg10: vector<64x1xf32>, %arg11: vector<1x48xf32>, %arg12: vector<64x1xf32>, %arg13: vector<1x48xf32>, %arg14: vector<1x48xf32>):
      %c0_68 = arith.constant 0 : index
      %c0_69 = arith.constant 0 : index
      %138 = vector.load %arg7[%c0_68, %c0_69] : memref<64x48xf32, #tpu.memory_space<vmem>>, vector<64x48xf32>
      %139 = arith.divf %7, %arg14 : vector<1x48xf32>
      %140 = vector.broadcast %139 : vector<1x48xf32> to vector<64x48xf32>
      %141 = arith.mulf %138, %140 : vector<64x48xf32>
      %cst_70 = arith.constant dense<0.000000e+00> : vector<64xf32>
      %142 = vector.multi_reduction <add>, %141, %cst_70 [1] : vector<64x48xf32> to vector<64xf32>
      %143 = vector.shape_cast %142 : vector<64xf32> to vector<64x1xf32>
      %144 = arith.divf %5, %143 : vector<64x1xf32>
      %145 = vector.broadcast %144 : vector<64x1xf32> to vector<64x48xf32>
      %146 = arith.mulf %138, %145 : vector<64x48xf32>
      %cst_71 = arith.constant dense<0.000000e+00> : vector<48xf32>
      %147 = vector.multi_reduction <add>, %146, %cst_71 [0] : vector<64x48xf32> to vector<48xf32>
      %148 = vector.shape_cast %147 : vector<48xf32> to vector<1x48xf32>
      %149 = arith.divf %7, %148 : vector<1x48xf32>
      %150 = vector.broadcast %149 : vector<1x48xf32> to vector<64x48xf32>
      %151 = arith.mulf %138, %150 : vector<64x48xf32>
      %cst_72 = arith.constant dense<0.000000e+00> : vector<64xf32>
      %152 = vector.multi_reduction <add>, %151, %cst_72 [1] : vector<64x48xf32> to vector<64xf32>
      %153 = vector.shape_cast %152 : vector<64xf32> to vector<64x1xf32>
      %154 = arith.divf %5, %153 : vector<64x1xf32>
      %155 = vector.broadcast %154 : vector<64x1xf32> to vector<64x48xf32>
      %156 = arith.mulf %138, %155 : vector<64x48xf32>
      %cst_73 = arith.constant dense<0.000000e+00> : vector<48xf32>
      %157 = vector.multi_reduction <add>, %156, %cst_73 [0] : vector<64x48xf32> to vector<48xf32>
      %158 = vector.shape_cast %157 : vector<48xf32> to vector<1x48xf32>
      %159 = arith.mulf %149, %158 : vector<1x48xf32>
      %160 = arith.subf %159, %7 : vector<1x48xf32>
      %161 = math.absf %160 : vector<1x48xf32>
      %162 = vector.shape_cast %161 : vector<1x48xf32> to vector<1x1x48xf32>
      %cst_74 = arith.constant dense<0xFF800000> : vector<1xf32>
      %163 = vector.multi_reduction <maximumf>, %162, %cst_74 [1, 2] : vector<1x1x48xf32> to vector<1xf32>
      %164 = vector.shape_cast %163 : vector<1xf32> to vector<1x1x1xf32>
      %165 = vector.extract %164[0, 0, 0] : f32 from vector<1x1x1xf32>
      %166 = arith.cmpf olt, %165, %46 : f32
      %167 = math.absf %154 : vector<64x1xf32>
      %168 = vector.shape_cast %167 : vector<64x1xf32> to vector<1x64x1xf32>
      %cst_75 = arith.constant dense<0xFF800000> : vector<1xf32>
      %169 = vector.multi_reduction <maximumf>, %168, %cst_75 [1, 2] : vector<1x64x1xf32> to vector<1xf32>
      %170 = vector.shape_cast %169 : vector<1xf32> to vector<1x1x1xf32>
      %171 = vector.extract %170[0, 0, 0] : f32 from vector<1x1x1xf32>
      %172 = math.absf %149 : vector<1x48xf32>
      %173 = vector.shape_cast %172 : vector<1x48xf32> to vector<1x1x48xf32>
      %cst_76 = arith.constant dense<0xFF800000> : vector<1xf32>
      %174 = vector.multi_reduction <maximumf>, %173, %cst_76 [1, 2] : vector<1x1x48xf32> to vector<1xf32>
      %175 = vector.shape_cast %174 : vector<1xf32> to vector<1x1x1xf32>
      %176 = vector.extract %175[0, 0, 0] : f32 from vector<1x1x1xf32>
      %177 = arith.maximumf %171, %176 : f32
      %cst_77 = arith.constant 1.000000e+02 : f32
      %178 = arith.cmpf ogt, %177, %cst_77 : f32
      %true = arith.constant true
      %179 = arith.xori %166, %true : i1
      %180 = arith.andi %179, %178 : i1
      %181 = math.log %154 : vector<64x1xf32>
      %cst_78 = arith.constant 1.000000e+00 : f32
      %182 = vector.broadcast %cst_78 : f32 to vector<64x1xf32>
      %183 = arith.mulf %182, %181 : vector<64x1xf32>
      %184 = arith.subf %arg12, %183 : vector<64x1xf32>
      %185 = arith.select %180, %184, %arg12 : vector<64x1xf32>
      %186 = math.log %149 : vector<1x48xf32>
      %cst_79 = arith.constant 1.000000e+00 : f32
      %187 = vector.broadcast %cst_79 : f32 to vector<1x48xf32>
      %188 = arith.mulf %187, %186 : vector<1x48xf32>
      %189 = arith.subf %arg13, %188 : vector<1x48xf32>
      %190 = arith.select %180, %189, %arg13 : vector<1x48xf32>
      %cst_80 = arith.constant 1.000000e+00 : f32
      %191 = vector.broadcast %cst_80 : f32 to vector<64x1xf32>
      %192 = arith.select %180, %191, %154 : vector<64x1xf32>
      %cst_81 = arith.constant 1.000000e+00 : f32
      %193 = vector.broadcast %cst_81 : f32 to vector<1x48xf32>
      %194 = arith.select %180, %193, %149 : vector<1x48xf32>
      %195 = arith.mulf %149, %158 : vector<1x48xf32>
      %196 = arith.select %180, %195, %158 : vector<1x48xf32>
      %197 = arith.extui %180 : i1 to i32
      %c0_i32_82 = arith.constant 0 : i32
      %198 = arith.cmpi ne, %197, %c0_i32_82 : i32
      scf.if %198 {
        %c0_83 = arith.constant 0 : index
        %c0_84 = arith.constant 0 : index
        %200 = vector.load %arg6[%c0_83, %c0_84] : memref<64x48xf32, #tpu.memory_space<vmem>>, vector<64x48xf32>
        %cst_85 = arith.constant 1.000000e+00 : f32
        %201 = vector.broadcast %cst_85 : f32 to vector<64x1xf32>
        %202 = arith.mulf %185, %201 : vector<64x1xf32>
        %203 = vector.broadcast %202 : vector<64x1xf32> to vector<64x48xf32>
        %204 = arith.subf %200, %203 : vector<64x48xf32>
        %cst_86 = arith.constant 1.000000e+00 : f32
        %205 = vector.broadcast %cst_86 : f32 to vector<1x48xf32>
        %206 = arith.mulf %190, %205 : vector<1x48xf32>
        %207 = vector.broadcast %206 : vector<1x48xf32> to vector<64x48xf32>
        %208 = arith.subf %204, %207 : vector<64x48xf32>
        %209 = math.exp %208 : vector<64x48xf32>
        %c0_87 = arith.constant 0 : index
        %c0_88 = arith.constant 0 : index
        %210 = vector.load %arg7[%c0_87, %c0_88] : memref<64x48xf32, #tpu.memory_space<vmem>>, vector<64x48xf32>
        tpu.vector_store %arg7[%c0_87, %c0_88], %209 {strides = array<i32>} : memref<64x48xf32, #tpu.memory_space<vmem>>, vector<64x48xf32>,
      } else {
      }
      %c2_i32 = arith.constant 2 : i32
      %199 = arith.addi %arg8, %c2_i32 : i32
      scf.yield %199, %166, %192, %194, %185, %190, %196 : i32, i1, vector<64x1xf32>, vector<1x48xf32>, vector<64x1xf32>, vector<1x48xf32>, vector<1x48xf32>
    }
    %c0_30 = arith.constant 0 : index
    %c0_31 = arith.constant 0 : index
    %50 = vector.load %arg6[%c0_30, %c0_31] : memref<64x48xf32, #tpu.memory_space<vmem>>, vector<64x48xf32>
    %51 = math.log %49#2 : vector<64x1xf32>
    %cst_32 = arith.constant -1.000000e+00 : f32
    %52 = vector.broadcast %cst_32 : f32 to vector<64x1xf32>
    %53 = arith.mulf %52, %51 : vector<64x1xf32>
    %54 = arith.addf %53, %49#4 : vector<64x1xf32>
    %55 = math.log %49#3 : vector<1x48xf32>
    %cst_33 = arith.constant -1.000000e+00 : f32
    %56 = vector.broadcast %cst_33 : f32 to vector<1x48xf32>
    %57 = arith.mulf %56, %55 : vector<1x48xf32>
    %58 = arith.addf %57, %49#5 : vector<1x48xf32>
    %cst_34 = arith.constant 7.35150814 : f32
    %59 = vector.broadcast %cst_34 : f32 to vector<64x1xf32>
    %60 = arith.subf %59, %23 : vector<64x1xf32>
    %61 = vector.broadcast %60 : vector<64x1xf32> to vector<64x48xf32>
    %62 = arith.addf %50, %61 : vector<64x48xf32>
    %cst_35 = arith.constant 1.000000e+00 : f32
    %63 = vector.broadcast %cst_35 : f32 to vector<1x48xf32>
    %64 = arith.mulf %58, %63 : vector<1x48xf32>
    %65 = vector.broadcast %64 : vector<1x48xf32> to vector<64x48xf32>
    %66 = arith.subf %62, %65 : vector<64x48xf32>
    %c0_36 = arith.constant 0 : index
    %c0_37 = arith.constant 0 : index
    %67 = vector.load %arg7[%c0_36, %c0_37] : memref<64x48xf32, #tpu.memory_space<vmem>>, vector<64x48xf32>
    tpu.vector_store %arg7[%c0_36, %c0_37], %66 {strides = array<i32>} : memref<64x48xf32, #tpu.memory_space<vmem>>, vector<64x48xf32>,
    %c0_38 = arith.constant 0 : index
    %c0_39 = arith.constant 0 : index
    %68 = vector.load %arg7[%c0_38, %c0_39] : memref<64x48xf32, #tpu.memory_space<vmem>>, vector<64x48xf32>
    %cst_40 = arith.constant dense<0xFF800000> : vector<64xf32>
    %69 = vector.multi_reduction <maximumf>, %68, %cst_40 [1] : vector<64x48xf32> to vector<64xf32>
    %70 = vector.shape_cast %69 : vector<64xf32> to vector<64x1xf32>
    %71 = vector.broadcast %70 : vector<64x1xf32> to vector<64x48xf32>
    %72 = arith.subf %68, %71 : vector<64x48xf32>
    %73 = math.exp %72 : vector<64x48xf32>
    %cst_41 = arith.constant dense<0.000000e+00> : vector<64xf32>
    %74 = vector.multi_reduction <add>, %73, %cst_41 [1] : vector<64x48xf32> to vector<64xf32>
    %75 = vector.shape_cast %74 : vector<64xf32> to vector<64x1xf32>
    %76 = math.log %75 : vector<64x1xf32>
    %77 = arith.addf %70, %76 : vector<64x1xf32>
    %cst_42 = arith.constant 1.000000e+00 : f32
    %78 = vector.broadcast %cst_42 : f32 to vector<64x1xf32>
    %79 = arith.mulf %78, %77 : vector<64x1xf32>
    %cst_43 = arith.constant 7.35150814 : f32
    %80 = vector.broadcast %cst_43 : f32 to vector<64x1xf32>
    %81 = arith.subf %79, %80 : vector<64x1xf32>
    %cst_44 = arith.constant 7.35150814 : f32
    %82 = vector.broadcast %cst_44 : f32 to vector<1x48xf32>
    %83 = arith.subf %82, %24 : vector<1x48xf32>
    %84 = vector.broadcast %83 : vector<1x48xf32> to vector<64x48xf32>
    %85 = arith.addf %50, %84 : vector<64x48xf32>
    %cst_45 = arith.constant 1.000000e+00 : f32
    %86 = vector.broadcast %cst_45 : f32 to vector<64x1xf32>
    %87 = arith.mulf %54, %86 : vector<64x1xf32>
    %88 = vector.broadcast %87 : vector<64x1xf32> to vector<64x48xf32>
    %89 = arith.subf %85, %88 : vector<64x48xf32>
    %c0_46 = arith.constant 0 : index
    %c0_47 = arith.constant 0 : index
    %90 = vector.load %arg7[%c0_46, %c0_47] : memref<64x48xf32, #tpu.memory_space<vmem>>, vector<64x48xf32>
    tpu.vector_store %arg7[%c0_46, %c0_47], %89 {strides = array<i32>} : memref<64x48xf32, #tpu.memory_space<vmem>>, vector<64x48xf32>,
    %c0_48 = arith.constant 0 : index
    %c0_49 = arith.constant 0 : index
    %91 = vector.load %arg7[%c0_48, %c0_49] : memref<64x48xf32, #tpu.memory_space<vmem>>, vector<64x48xf32>
    %cst_50 = arith.constant dense<0xFF800000> : vector<48xf32>
    %92 = vector.multi_reduction <maximumf>, %91, %cst_50 [0] : vector<64x48xf32> to vector<48xf32>
    %93 = vector.shape_cast %92 : vector<48xf32> to vector<1x48xf32>
    %94 = vector.broadcast %93 : vector<1x48xf32> to vector<64x48xf32>
    %95 = arith.subf %91, %94 : vector<64x48xf32>
    %96 = math.exp %95 : vector<64x48xf32>
    %cst_51 = arith.constant dense<0.000000e+00> : vector<48xf32>
    %97 = vector.multi_reduction <add>, %96, %cst_51 [0] : vector<64x48xf32> to vector<48xf32>
    %98 = vector.shape_cast %97 : vector<48xf32> to vector<1x48xf32>
    %99 = math.log %98 : vector<1x48xf32>
    %100 = arith.addf %93, %99 : vector<1x48xf32>
    %cst_52 = arith.constant 1.000000e+00 : f32
    %101 = vector.broadcast %cst_52 : f32 to vector<1x48xf32>
    %102 = arith.mulf %101, %100 : vector<1x48xf32>
    %cst_53 = arith.constant 7.35150814 : f32
    %103 = vector.broadcast %cst_53 : f32 to vector<1x48xf32>
    %104 = arith.subf %102, %103 : vector<1x48xf32>
    %105 = arith.mulf %81, %5 : vector<64x1xf32>
    %106 = vector.shape_cast %105 : vector<64x1xf32> to vector<1x64x1xf32>
    %cst_54 = arith.constant dense<0.000000e+00> : vector<1xf32>
    %107 = vector.multi_reduction <add>, %106, %cst_54 [1, 2] : vector<1x64x1xf32> to vector<1xf32>
    %108 = vector.shape_cast %107 : vector<1xf32> to vector<1x1x1xf32>
    %109 = vector.extract %108[0, 0, 0] : f32 from vector<1x1x1xf32>
    %110 = arith.mulf %104, %7 : vector<1x48xf32>
    %111 = vector.shape_cast %110 : vector<1x48xf32> to vector<1x1x48xf32>
    %cst_55 = arith.constant dense<0.000000e+00> : vector<1xf32>
    %112 = vector.multi_reduction <add>, %111, %cst_55 [1, 2] : vector<1x1x48xf32> to vector<1xf32>
    %113 = vector.shape_cast %112 : vector<1xf32> to vector<1x1x1xf32>
    %114 = vector.extract %113[0, 0, 0] : f32 from vector<1x1x1xf32>
    %cst_56 = arith.constant 1.000000e+00 : f32
    %115 = vector.broadcast %cst_56 : f32 to vector<64x1xf32>
    %116 = arith.mulf %81, %115 : vector<64x1xf32>
    %117 = vector.broadcast %116 : vector<64x1xf32> to vector<64x48xf32>
    %118 = arith.subf %50, %117 : vector<64x48xf32>
    %cst_57 = arith.constant 1.000000e+00 : f32
    %119 = vector.broadcast %cst_57 : f32 to vector<1x48xf32>
    %120 = arith.mulf %104, %119 : vector<1x48xf32>
    %121 = vector.broadcast %120 : vector<1x48xf32> to vector<64x48xf32>
    %122 = arith.subf %118, %121 : vector<64x48xf32>
    %123 = math.exp %122 : vector<64x48xf32>
    %c0_58 = arith.constant 0 : index
    %c0_59 = arith.constant 0 : index
    %124 = vector.load %arg7[%c0_58, %c0_59] : memref<64x48xf32, #tpu.memory_space<vmem>>, vector<64x48xf32>
    tpu.vector_store %arg7[%c0_58, %c0_59], %123 {strides = array<i32>} : memref<64x48xf32, #tpu.memory_space<vmem>>, vector<64x48xf32>,
    %c0_60 = arith.constant 0 : index
    %c0_61 = arith.constant 0 : index
    %125 = vector.load %arg7[%c0_60, %c0_61] : memref<64x48xf32, #tpu.memory_space<vmem>>, vector<64x48xf32>
    %126 = vector.shape_cast %125 : vector<64x48xf32> to vector<1x64x48xf32>
    %cst_62 = arith.constant dense<0.000000e+00> : vector<1xf32>
    %127 = vector.multi_reduction <add>, %126, %cst_62 [1, 2] : vector<1x64x48xf32> to vector<1xf32>
    %128 = vector.shape_cast %127 : vector<1xf32> to vector<1x1x1xf32>
    %129 = vector.extract %128[0, 0, 0] : f32 from vector<1x1x1xf32>
    %cst_63 = arith.constant 0.000000e+00 : f32
    %130 = arith.subf %cst_63, %109 : f32
    %131 = arith.subf %130, %114 : f32
    %cst_64 = arith.constant 1.000000e+00 : f32
    %132 = arith.mulf %cst_64, %129 : f32
    %133 = arith.subf %131, %132 : f32
    %134 = vector.broadcast %133 : f32 to vector<8x128xf32>
    %c0_65 = arith.constant 0 : index
    %c0_66 = arith.constant 0 : index
    %c0_67 = arith.constant 0 : index
    %135 = vector.load %arg5[%c0_65, %c0_66, %c0_67] : memref<1x8x128xf32, #tpu.memory_space<vmem>>, vector<1x8x128xf32>
    %136 = vector.shape_cast %135 : vector<1x8x128xf32> to vector<8x128xf32>
    %137 = vector.shape_cast %134 : vector<8x128xf32> to vector<1x8x128xf32>
    tpu.vector_store %arg5[%c0_65, %c0_66, %c0_67], %137 {strides = array<i32>} : memref<1x8x128xf32, #tpu.memory_space<vmem>>, vector<1x8x128xf32>,
    return
  }
  func.func @transform_0(%arg0: i32) -> (i32, i32, i32) {
    %c0_i32 = arith.constant 0 : i32
    %c0_i32_0 = arith.constant 0 : i32
    %c0_i32_1 = arith.constant 0 : i32
    return %arg0, %c0_i32, %c0_i32_0 : i32, i32, i32
  }
  func.func @transform_1(%arg0: i32) -> (i32, i32, i32) {
    %c0_i32 = arith.constant 0 : i32
    %c0_i32_0 = arith.constant 0 : i32
    %c0_i32_1 = arith.constant 0 : i32
    return %arg0, %c0_i32, %c0_i32_0 : i32, i32, i32
  }
  func.func @transform_2(%arg0: i32) -> (i32, i32, i32) {
    %c0_i32 = arith.constant 0 : i32
    %c0_i32_0 = arith.constant 0 : i32
    %c0_i32_1 = arith.constant 0 : i32
    return %arg0, %c0_i32, %c0_i32_0 : i32, i32, i32
  }
  func.func @transform_3(%arg0: i32) -> (i32, i32, i32) {
    %c0_i32 = arith.constant 0 : i32
    %c0_i32_0 = arith.constant 0 : i32
    %c0_i32_1 = arith.constant 0 : i32
    return %arg0, %c0_i32, %c0_i32_0 : i32, i32, i32
  }
  func.func @transform_4(%arg0: i32) -> (i32, i32, i32) {
    %c0_i32 = arith.constant 0 : i32
    %c0_i32_0 = arith.constant 0 : i32
    %c0_i32_1 = arith.constant 0 : i32
    return %arg0, %c0_i32, %c0_i32_0 : i32, i32, i32
  }
}

</mosaic_0001>

<bundles_post_ra>
// kernel: tpu_custom_call.1
= control target key start
LH: loop header
LB: loop body
LE: loop exit
PB: predicated region body
PF: predicated region fallthrough
CT: control target
= control target key end

     0   :  { %9 = vsyncpa [#allocation5], 0  ;;  %s3870_s0 = inlined_call_operand.vmem [shape: f32[2,64,8], index: 0, kind: input, shape index: {}]   ;;  %s3871_s1 = inlined_call_operand.vmem [shape: f32[2,48,8], index: 1, kind: input, shape index: {}]   ;;  %s3872_s2 = inlined_call_operand.vmem [shape: f32[2,64,1], index: 2, kind: input, shape index: {}]   ;;  %s3873_s3 = inlined_call_operand.vmem [shape: f32[2,1,48], index: 3, kind: input, shape index: {}]   ;;  %s3874_s4 = inlined_call_operand.hbm [shape: f32[2,8,128], index: 4, kind: output, shape index: {}]  }
   0x1   :  { %11 = vsyncpa [#allocation5 + $0x1], 0  ;;  %s2617_s15 = smov 0   ;;  %s2619_s16 = smov 0  }
   0x2   :  { %s2621_s17 = smov 0   ;;  %s2623_s18 = smov 0  }
   0x3 LB: > { %s2638_s19 = sadd.s32 4294967295, %s2541_s18   ;;  %s2021_s20 = sadd.s32 4294967294, %s2541_s18   ;;  %s2541_s18 = sphi %s2623_s18, %s3965_s18   ;;  %s2537_s17 = sphi %s2621_s17, %s3964_s17   ;;  %s2533_s16 = sphi %s2619_s16, %s3963_s16   ;;  %s2529_s15 = sphi %s2617_s15, %s3962_s15  }
   0x4   : > { %s2642_s21 = sadd.s32 1, %s2541_s18   ;;  %s128_s22 = sadd.s32 1, %s2537_s17 }
   0x5   : > { %s125_s23 = ssub.s32 %s2541_s18, %s2642_s21  ;;  %p138_p0 = scmp.ne.s32.totalorder %s2537_s17, %s2533_s16 }
   0x6   : > { %p126_p1 = scmp.eq.s32.totalorder %s125_s23, 0  ;;  %p139_p2 = scmp.eq.s32.totalorder %s2638_s19, 1 }
   0x7   : > { %p144_p3 = scmp.ne.s32.totalorder %s2533_s16, %s2529_s15  ;;  %p145_p4 = scmp.eq.s32.totalorder %s2021_s20, 1 }
   0x8   : > { %s2653_s24 = scalar_select %p126_p1, %s2537_s17, %s128_s22  }
   0x9   : > { %p2655_p5 = por %p139_p2, %p138_p0  ;;  %p2659_p6 = por %p145_p4, %p144_p3 }
   0xa   : > { %p2024_p7 = scmp.ge.s32.totalorder %s2541_s18, 1  ;;  %p193_p8 = scmp.lt.s32.totalorder %s2541_s18, 3 }
   0xc   : > { %p194_p9 = pnand %p2024_p7, %p193_p8 }
   0xe   : > { %197 = sbr.rel (%p194_p9) target bundleno = 1852 (0x73c), region = 36 }
  0x13   : > { %p232_p10 = scmp.lt.s32.totalorder %s2638_s19, 1  ;;  %s229_s27 = sand.u32 1, %s2533_s16   ;;  %vm281_vm0 = vcmask 64512   ;;  %vm596_vm1 = vcmask 385024   ;;  %v3875_v25 = vmov 0   ;;  %v2588_v41 = vmov 1.0  }
  0x14   : > { %s2669_s28 = sshll.u32 %s229_s27, 3  ;;  %2235 = vset.pattern.permute.xlu2 %v3875_v25  ;;  %2237 = vset.pattern.permute.xlu1 %v3875_v25  ;;  %vm562_vm2 = vcmask 392192  }
  0x15   : > { %s2672_s29 = scalar_select %p232_p10, %s2638_s19, 1  ;;  %2236 = vset.pattern.permute.xlu0 %v3875_v25 }
  0x16   : > { %s231_s7 = scalar_lea.vmem [#allocation4], %s2669_s28 }
  0x17   : > { %s2088_s30 = smul.u32 48, %s2672_s29  ;;  %s2074_s5 = sshll.u32 %s2672_s29, 6 }
  0x18   : > { %s2681_s8 = scalar_lea.vmem %s3870_s0, %s2074_s5  ;;  %s249_s14 = scalar_lea.vmem %s3873_s3, %s2672_s29 }
  0x19   : > { %s2686_s11 = scalar_lea.vmem %s3871_s1, %s2088_s30  ;;  %v2689_v0 = vld [vmem:[%s2681_s8 + $0x8] sm:$0xff]  ;;  %v2692_v1 = vld [vmem:[%s2681_s8 + $0x18] sm:$0xff]  ;;  %v2707_v7 = vld [vmem:[%s2681_s8 + $0x10] sm:$0xff]  ;;  %s2755_s23 = scalar_lea.vmem %s3872_s2, %s2074_s5 }
  0x1a   : > { %v263_v2 = vld [vmem:[%s2686_s11 + $0x28] sm:$0xff]  ;;  %v274_v3 = vmul.f32 %v2689_v0, %v2689_v0  ;;  %v276_v4 = vmul.f32 %v2692_v1, %v2692_v1  ;;  %v262_v5 = vld [vmem:[%s2686_s11 + $0x20] sm:$0xff]  ;;  %v261_v14 = vld [vmem:[%s2686_s11 + $0x18] sm:$0xff]  ;;  %v275_v15 = vmul.f32 %v2707_v7, %v2707_v7  ;;  %s2589_s5 = smov 0.0001  }
  0x1b   : > { %2038 = vmatpush.xpose.msk.msra.mxu1 %vm281_vm0, %v263_v2  ;;  %2076 = vmatpush.xpose.msk.msra.mxu2 %vm281_vm0, %v263_v2  ;;  %v311_v6 = vmul.f32 %v263_v2, %v263_v2  ;;  %v2709_v8 = vld [vmem:[%s249_s14] sm:$0x1]  ;;  %v310_v12 = vmul.f32 %v262_v5, %v262_v5  ;;  %v309_v19 = vmul.f32 %v261_v14, %v261_v14  ;;  %v260_v22 = vld [vmem:[%s2686_s11 + $0x10] sm:$0xff]  ;;  %v259_v28 = vld [vmem:[%s2686_s11 + $0x8] sm:$0xff] }
  0x1c   : > { %2077 = vmatpush.xpose.msk.msra.mxu3 %vm281_vm0, %v263_v2  ;;  %v285_v9 = vsel %vm281_vm0, %v274_v3, 0.0  ;;  %v291_v10 = vsel %vm281_vm0, %v276_v4, 0.0  ;;  %v2715_v11 = vld [vmem:[%s2681_s8 + $0x20] sm:$0xff]  ;;  %v595_v13 = vand.u32 2147483647, %v2709_v8  ;;  %v288_v21 = vsel %vm281_vm0, %v275_v15, 0.0 }
  0x1d   : > { %2031 = vmatpush.xpose.msk.msra.mxu0 %vm281_vm0, %v311_v6  ;;  %286 = vadd.xlane.f32.xlu1 %v285_v9  ;;  %v250_v16 = vld [vmem:[%s2681_s8] sm:$0xff]  ;;  %v277_v17 = vmul.f32 %v2715_v11, %v2715_v11  ;;  %v256_v24 = vld [vmem:[%s2681_s8 + $0x30] sm:$0xff]  ;;  %v308_v26 = vmul.f32 %v260_v22, %v260_v22  ;;  %v255_v30 = vld [vmem:[%s2681_s8 + $0x28] sm:$0xff]  ;;  %v307_v31 = vmul.f32 %v259_v28, %v259_v28 }
  0x1e   : > { %292 = vadd.xlane.f32.xlu2 %v291_v10  ;;  %v597_v18 = vsel %vm596_vm1, %v595_v13, -inf  ;;  %v273_v20 = vmul.f32 %v250_v16, %v250_v16  ;;  %v279_v29 = vmul.f32 %v256_v24, %v256_v24  ;;  %v278_v32 = vmul.f32 %v255_v30, %v255_v30  ;;  %v258_v34 = vld [vmem:[%s2686_s11] sm:$0xff]  ;;  %v257_v35 = vld [vmem:[%s2681_s8 + $0x38] sm:$0xff]  ;;  %v2778_v42 = vld [vmem:[%s2755_s23 + $0x8] sm:$0xff]  ;;  %s2917_s8 = smov 0  }
  0x1f   : > { %2039 = vmatpush.xpose.msk.msra.mxu1 %vm281_vm0, %v262_v5  ;;  %2078 = vmatpush.xpose.msk.msra.mxu2 %vm281_vm0, %v262_v5  ;;  %v294_v23 = vsel %vm281_vm0, %v277_v17, 0.0  ;;  %v306_v36 = vmul.f32 %v258_v34, %v258_v34  ;;  %v280_v38 = vmul.f32 %v257_v35, %v257_v35  ;;  %v2764_v39 = vld [vmem:[%s2755_s23] sm:$0xff]  ;;  %v2781_v43 = vld [vmem:[%s2755_s23 + $0x18] sm:$0xff]  ;;  %v2796_v48 = vld [vmem:[%s2755_s23 + $0x10] sm:$0xff] }
  0x20   : > { %2079 = vmatpush.xpose.msk.msra.mxu3 %vm281_vm0, %v262_v5  ;;  %598 = vmax.xlane.f32.xlu0 %v597_v18  ;;  %v282_v27 = vsel %vm281_vm0, %v273_v20, 0.0  ;;  %v300_v33 = vsel %vm281_vm0, %v279_v29, 0.0  ;;  %v297_v37 = vsel %vm281_vm0, %v278_v32, 0.0  ;;  %2238 = vlog2.f32 %v2764_v39  ;;  %v2793_v46 = vld [vmem:[%s2755_s23 + $0x38] sm:$0xff]  ;;  %v2800_v49 = vld [vmem:[%s2755_s23 + $0x20] sm:$0xff]  ;;  %v2814_v54 = vld [vmem:[%s2755_s23 + $0x30] sm:$0xff] }
  0x21   : > { %2032 = vmatpush.xpose.msk.msra.mxu0 %vm281_vm0, %v310_v12  ;;  %v303_v40 = vsel %vm281_vm0, %v280_v38, 0.0  ;;  %2240 = vlog2.f32 %v2778_v42  ;;  %v2818_v56 = vld [vmem:[%s2755_s23 + $0x28] sm:$0xff] }
  0x22   : > { %2242 = vlog2.f32 %v2781_v43 }
  0x23   : > { %2040 = vmatpush.xpose.msk.msra.mxu1 %vm281_vm0, %v261_v14  ;;  %2080 = vmatpush.xpose.msk.msra.mxu2 %vm281_vm0, %v261_v14  ;;  %2244 = vlog2.f32 %v2793_v46 }
  0x24   : > { %2081 = vmatpush.xpose.msk.msra.mxu3 %vm281_vm0, %v261_v14  ;;  %2246 = vlog2.f32 %v2796_v48 }
  0x25   : > { %2033 = vmatpush.xpose.msk.msra.mxu0 %vm281_vm0, %v309_v19  ;;  %289 = vadd.xlane.f32.xlu1 %v288_v21  ;;  %2248 = vlog2.f32 %v2800_v49 }
  0x26   : > { %295 = vadd.xlane.f32.xlu2 %v294_v23  ;;  %v2239_v44 = vpop.eup %2238  ;;  %2250 = vlog2.f32 %v2814_v54 }
  0x27   : > { %2041 = vmatpush.xpose.msk.msra.mxu1 %vm281_vm0, %v260_v22  ;;  %2082 = vmatpush.xpose.msk.msra.mxu2 %vm281_vm0, %v260_v22  ;;  %v2789_v45 = vmul.f32 0.6931472, %v2239_v44  ;;  %v2241_v47 = vpop.eup %2240  ;;  %2252 = vlog2.f32 %v2818_v56 }
  0x28   : > { %2083 = vmatpush.xpose.msk.msra.mxu3 %vm281_vm0, %v260_v22  ;;  %283 = vadd.xlane.f32.xlu0 %v282_v27  ;;  %v2243_v50 = vpop.eup %2242  ;;  %v2804_v51 = vmul.f32 0.6931472, %v2241_v47  ;;  %2254 = vlog2.f32 %v2709_v8 }
  0x29   : > { %2034 = vmatpush.xpose.msk.msra.mxu0 %vm281_vm0, %v308_v26  ;;  %3888 = vst [vmem:[#allocation7_spill] sm:$0xff] %v2789_v45  ;;  %v2809_v52 = vmul.f32 0.6931472, %v2243_v50  ;;  %v2245_v53 = vpop.eup %2244 }
  0x2a   : > { %3889 = vst [vmem:[#allocation8_spill] sm:$0xff] %v2804_v51  ;;  %v2247_v55 = vpop.eup %2246  ;;  %v2821_v58 = vmul.f32 0.6931472, %v2245_v53 }
  0x2b   : > { %2042 = vmatpush.xpose.msk.msra.mxu1 %vm281_vm0, %v259_v28  ;;  %2084 = vmatpush.xpose.msk.msra.mxu2 %vm281_vm0, %v259_v28  ;;  %3890 = vst [vmem:[#allocation9_spill] sm:$0xff] %v2809_v52  ;;  %v2249_v57 = vpop.eup %2248  ;;  %v2824_v59 = vmul.f32 0.6931472, %v2247_v55 }
  0x2c   : > { %2085 = vmatpush.xpose.msk.msra.mxu3 %vm281_vm0, %v259_v28  ;;  %3891 = vst [vmem:[#allocation10_spill] sm:$0xff] %v2821_v58  ;;  %v2826_v60 = vmul.f32 0.6931472, %v2249_v57  ;;  %v2251_v61 = vpop.eup %2250 }
  0x2d   : > { %2035 = vmatpush.xpose.msk.msra.mxu0 %vm281_vm0, %v307_v31  ;;  %301 = vadd.xlane.f32.xlu1 %v300_v33  ;;  %3892 = vst [vmem:[#allocation11_spill] sm:$0xff] %v2824_v59  ;;  %v2253_v62 = vpop.eup %2252  ;;  %v2831_v63 = vmul.f32 0.6931472, %v2251_v61 }
  0x2e   : > { %3893 = vst [vmem:[#allocation12_spill] sm:$0xff] %v2826_v60  ;;  %v2255_v26 = vpop.eup %2254 }
  0x2f   : > { %2043 = vmatpush.xpose.msk.msra.mxu1 %vm281_vm0, %v258_v34  ;;  %2086 = vmatpush.xpose.msk.msra.mxu2 %vm281_vm0, %v258_v34  ;;  %3894 = vst [vmem:[#allocation13_spill] sm:$0xff] %v2831_v63  ;;  %v2850_v38 = vmul.f32 0.6931472, %v2255_v26 }
  0x30   : > { %2087 = vmatpush.xpose.msk.msra.mxu3 %vm281_vm0, %v258_v34  ;;  %298 = vadd.xlane.f32.xlu0 %v297_v37 }
  0x31   : > { %2036 = vmatpush.xpose.msk.msra.mxu0 %vm281_vm0, %v306_v36  ;;  %3896 = vst [vmem:[#allocation15_spill] sm:$0xff] %v2850_v38  ;;  %v2853_v61 = vperm.slane %v2850_v38, 0 }
  0x32   : > { %2044 = vmatmul.msk.f32.vlgmr.msra.gmra.mxu1 %vm281_vm0, %v250_v16  ;;  %2046 = vmatmul.msk.f32.vlgmr.msra.gmra.mxu2 %vm281_vm0, %v2707_v7 }
  0x33   : > { %2049 = vmatmul.msk.f32.vlgmr.msra.gmra.mxu3 %vm281_vm0, %v255_v30 }
  0x34   : > { %2037 = vmatmul.msk.f32.vlgmr.msra.gmra.mxu0 %vm281_vm0, %v2588_v41 }
  0x35   : > { %304 = vadd.xlane.f32.xlu1 %v303_v40 }
  0x3a   : > { %2045 = vmatmul.msk.f32.gmra.mxu1 %vm281_vm0, %v2689_v0  ;;  %2047 = vmatmul.msk.f32.gmra.mxu2 %vm281_vm0, %v2692_v1  ;;  %v2833_v0 = vmul.f32 0.6931472, %v2253_v62 }
  0x3b   : > { %2050 = vmatmul.msk.f32.gmra.mxu3 %vm281_vm0, %v256_v24 }
  0x3c   : > { %3895 = vst [vmem:[#allocation14_spill] sm:$0xff] %v2833_v0 }
  0x3e   : > { %505 = vperm.xlu2 %2235, %v2789_v45  }
  0x42   : > { %2048 = vmatmul.msk.f32.gmra.mxu2 %vm281_vm0, %v2715_v11 }
  0x43   : > { %2051 = vmatmul.msk.f32.gmra.mxu3 %vm281_vm0, %v257_v35 }
  0x44   : > { %510 = vperm.xlu0 %2236, %v2804_v51  }
  0x46   : > { %520 = vperm.xlu2 %2235, %v2809_v52  }
  0x4c   : > { %540 = vperm.xlu0 %2236, %v2821_v58  }
  0x4e   : > { %515 = vperm.xlu1 %2237, %v2824_v59   ;;  %525 = vperm.xlu2 %2235, %v2826_v60  }
  0x56   : > { %535 = vperm.xlu1 %2237, %v2831_v63   ;;  %530 = vperm.xlu2 %2235, %v2833_v0  }
  0x90   : > { %v287_v7 = vpop.xlane.xlu1 %286 }
  0x91   : > { %v293_v1 = vpop.xlane.xlu2 %292 }
  0x93   : > { %v599_v2 = vpop.xlane.xlu0 %598 }
  0x94   : > { %v600_v3 = vrot.slane %v599_v2, 4 }
  0x96   : > { %v601_v4 = vmax.f32 %v599_v2, %v600_v3 }
  0x98   : > { %v602_v5 = vrot.slane %v601_v4, 2  ;;  %v290_v13 = vpop.xlane.xlu1 %289 }
  0x99   : > { %v2837_v6 = vpop.xlane.xlu2 %295 }
  0x9a   : > { %v603_v9 = vmax.f32 %v601_v4, %v602_v5 }
  0x9b   : > { %v284_v14 = vpop.xlane.xlu0 %283 }
  0x9c   : > { %v604_v10 = vrot.slane %v603_v9, 1 }
  0x9e   : > { %v605_v11 = vmax.f32 %v603_v9, %v604_v10 }
  0xa0   : > { %2089 = vpush %v605_v11  ;;  %v302_v16 = vpop.xlane.xlu1 %301 }
  0xa1   : > { %v506_v12 = vpop.permute.xlu2 %505 }
  0xa3   : > { %v299_v20 = vpop.xlane.xlu0 %298 }
  0xa8   : > { %v305_v34 = vpop.xlane.xlu1 %304 }
  0xa9   : > { %v2839_v15 = vpop.permute.xlu2 %520 }
  0xaf   : > { %v412_v17 = vpop.f32.mrf.mxu1 }
  0xb0   : > { %v445_v21 = vmul.f32 2.0, %v412_v17 }
  0xb1   : > { %v350_v18 = vpop.f32.mrf.mxu0  ;;  %v2846_v27 = vpop.permute.xlu2 %525 }
  0xb2   : > { %v2842_v19 = vperm.slane %v350_v18, 0 }
  0xb4   : > { %v442_v23 = vadd.f32 %v2842_v19, %v299_v20  ;;  %v437_v24 = vadd.f32 %v2842_v19, %v284_v14  ;;  %v439_v28 = vadd.f32 %v2842_v19, %v290_v13  ;;  %v438_v36 = vadd.f32 %v2842_v19, %v287_v7 }
  0xb5   : > { %v418_v22 = vpop.f32.mrf.mxu2  ;;  %v440_v5 = vadd.f32 %v2842_v19, %v293_v1  ;;  %v443_v13 = vadd.f32 %v2842_v19, %v302_v16 }
  0xb6   : > { %v447_v29 = vmul.f32 2.0, %v418_v22  ;;  %v427_v30 = vpop.f32.mrf.mxu3  ;;  %v453_v33 = vsub.f32 %v437_v24, %v445_v21  ;;  %v511_v18 = vpop.permute.xlu0 %510 }
  0xb7   : > { %v450_v31 = vmul.f32 2.0, %v427_v30  ;;  %v415_v32 = vpop.f32.mrf.mxu1 }
  0xb8   : > { %v455_v35 = vsub.f32 %v439_v28, %v447_v29  ;;  %v446_v37 = vmul.f32 2.0, %v415_v32  ;;  %v461_v41 = vmax.f32 %v453_v33, 0.0 }
  0xb9   : > { %v458_v40 = vsub.f32 %v442_v23, %v450_v31  ;;  %v531_v20 = vpop.permute.xlu2 %530 }
  0xba   : > { %v463_v44 = vmax.f32 %v455_v35, 0.0  ;;  %v454_v47 = vsub.f32 %v438_v36, %v446_v37  ;;  %v487_v53 = vmul.f32 -0.125, %v461_v41 }
  0xbb   : > { %v466_v50 = vmax.f32 %v458_v40, 0.0 }
  0xbc   : > { %v462_v55 = vmax.f32 %v454_v47, 0.0  ;;  %v489_v57 = vmul.f32 -0.125, %v463_v44  ;;  %v2052_v3 = vadd.f32 -7.351508, %v487_v53 }
  0xbd   : > { %v492_v62 = vmul.f32 -0.125, %v466_v50  ;;  %v421_v2 = vpop.f32.mrf.mxu2  ;;  %v441_v50 = vadd.f32 %v2842_v19, %v2837_v6 }
  0xbe   : > { %v488_v4 = vmul.f32 -0.125, %v462_v55  ;;  %v448_v7 = vmul.f32 2.0, %v421_v2  ;;  %v430_v9 = vpop.f32.mrf.mxu3  ;;  %v2054_v10 = vadd.f32 -7.351508, %v489_v57  ;;  %v543_v17 = vadd.f32 %v2052_v3, %v506_v12 }
  0xbf   : > { %v2057_v11 = vadd.f32 -7.351508, %v492_v62  ;;  %v451_v14 = vmul.f32 2.0, %v430_v9  ;;  %v444_v57 = vadd.f32 %v2842_v19, %v305_v34 }
  0xc0   : > { %v456_v21 = vsub.f32 %v440_v5, %v448_v7  ;;  %v516_v22 = vpop.permute.xlu1 %515  ;;  %v2053_v23 = vadd.f32 -7.351508, %v488_v4  ;;  %v554_v29 = vadd.f32 %v2853_v61, %v543_v17 }
  0xc1   : > { %v548_v24 = vadd.f32 %v2057_v11, %v531_v20  ;;  %v459_v26 = vsub.f32 %v443_v13, %v451_v14  ;;  %v545_v28 = vadd.f32 %v2054_v10, %v516_v22 }
  0xc2   : > { %v464_v1 = vmax.f32 %v456_v21, 0.0  ;;  %v544_v30 = vadd.f32 %v2053_v23, %v511_v18  ;;  %563 = vst.msk [vmem:[#allocation2] sm:$0xff] %vm562_vm2, %v554_v29  ;;  %v571_v12 = vmul.f32 1.442695, %v554_v29 }
  0xc3   : > { %v559_v31 = vadd.f32 %v2853_v61, %v548_v24  ;;  %v467_v32 = vmax.f32 %v459_v26, 0.0  ;;  %v556_v16 = vadd.f32 %v2853_v61, %v545_v28  ;;  %v541_v26 = vpop.permute.xlu0 %540 }
  0xc4   : > { %v490_v33 = vmul.f32 -0.125, %v464_v1  ;;  %v555_v35 = vadd.f32 %v2853_v61, %v544_v30  ;;  %2256 = vpow2.f32 %v571_v12 }
  0xc5   : > { %568 = vst.msk [vmem:[#allocation2 + $0x28] sm:$0xff] %vm562_vm2, %v559_v31  ;;  %v581_v36 = vmul.f32 1.442695, %v559_v31  ;;  %v575_v37 = vmul.f32 1.442695, %v556_v16  ;;  %v424_v40 = vpop.f32.mrf.mxu2  ;;  %v493_v41 = vmul.f32 -0.125, %v467_v32 }
  0xc6   : > { %v2055_v44 = vadd.f32 -7.351508, %v490_v33  ;;  %565 = vst.msk [vmem:[#allocation2 + $0x10] sm:$0xff] %vm562_vm2, %v556_v16  ;;  %v573_v47 = vmul.f32 1.442695, %v555_v35  ;;  %v449_v53 = vmul.f32 2.0, %v424_v40  ;;  %v433_v55 = vpop.f32.mrf.mxu3 }
  0xc7   : > { %2258 = vpow2.f32 %v581_v36  ;;  %564 = vst.msk [vmem:[#allocation2 + $0x8] sm:$0xff] %vm562_vm2, %v555_v35  ;;  %v452_v62 = vmul.f32 2.0, %v433_v55  ;;  %v2058_v2 = vadd.f32 -7.351508, %v493_v41 }
  0xc8   : > { %v546_v3 = vadd.f32 %v2055_v44, %v2839_v15  ;;  %2260 = vpow2.f32 %v575_v37  ;;  %v457_v4 = vsub.f32 %v441_v50, %v449_v53  ;;  %v536_v5 = vpop.permute.xlu1 %535 }
  0xc9   : > { %2262 = vpow2.f32 %v573_v47  ;;  %v460_v7 = vsub.f32 %v444_v57, %v452_v62  ;;  %v549_v9 = vadd.f32 %v2058_v2, %v536_v5 }
  0xca   : > { %v557_v10 = vadd.f32 %v2853_v61, %v546_v3  ;;  %v465_v6 = vmax.f32 %v457_v4, 0.0  ;;  %v2257_v11 = vpop.eup %2256 }
  0xcb   : > { %v468_v13 = vmax.f32 %v460_v7, 0.0  ;;  %v560_v19 = vadd.f32 %v2853_v61, %v549_v9  ;;  %587 = vst.msk [vmem:[#allocation3] sm:$0xff] %vm562_vm2, %v2257_v11  ;;  %v609_v16 = vsel %vm562_vm2, %v2257_v11, 0.0  ;;  %v2901_v11 = vmov 0.0  }
  0xcc   : > { %566 = vst.msk [vmem:[#allocation2 + $0x18] sm:$0xff] %vm562_vm2, %v557_v10  ;;  %v577_v34 = vmul.f32 1.442695, %v557_v10  ;;  %v491_v14 = vmul.f32 -0.125, %v465_v6  ;;  %v2899_v6 = vmov 0.0  }
  0xcd   : > { %v2259_v17 = vpop.eup %2258  ;;  %v494_v15 = vmul.f32 -0.125, %v468_v13  ;;  %v583_v18 = vmul.f32 1.442695, %v560_v19  ;;  %569 = vst.msk [vmem:[#allocation2 + $0x30] sm:$0xff] %vm562_vm2, %v560_v19  ;;  %v2903_v13 = vmov 0.0   ;;  %v2905_v19 = vmov 0.0  }
  0xce   : > { %v2261_v20 = vpop.eup %2260  ;;  %592 = vst.msk [vmem:[#allocation3 + $0x28] sm:$0xff] %vm562_vm2, %v2259_v17  ;;  %2264 = vpow2.f32 %v577_v34  ;;  %v2056_v21 = vadd.f32 -7.351508, %v491_v14  ;;  %v618_v50 = vsel %vm562_vm2, %v2259_v17, 0.0  ;;  %v2907_v34 = vmov 0.0  }
  0xcf   : > { %v2263_v22 = vpop.eup %2262  ;;  %589 = vst.msk [vmem:[#allocation3 + $0x10] sm:$0xff] %vm562_vm2, %v2261_v20  ;;  %2266 = vpow2.f32 %v583_v18  ;;  %v2059_v23 = vadd.f32 -7.351508, %v494_v15  ;;  %v612_v35 = vsel %vm562_vm2, %v2261_v20, 0.0  ;;  %v2909_v14 = vmov 0.0  }
  0xd0   : > { %588 = vst.msk [vmem:[#allocation3 + $0x8] sm:$0xff] %vm562_vm2, %v2263_v22  ;;  %v547_v24 = vadd.f32 %v2056_v21, %v2846_v27  ;;  %v610_v1 = vsel %vm562_vm2, %v2263_v22, 0.0  ;;  %v2911_v17 = vmov 0.0   ;;  %v2913_v15 = vmov 0.0  }
  0xd1   : > { %v550_v28 = vadd.f32 %v2059_v23, %v541_v26  ;;  %s2090_s29 = spop %2089  ;;  %v611_v33 = vadd.f32 %v610_v1, %v609_v16  ;;  %v2915_v18 = vmov 0.0  }
  0xd2   : > { %v558_v29 = vadd.f32 %v2853_v61, %v547_v24  ;;  %s607_s30 = smul.f32 0.0001, %s2090_s29 }
  0xd3   : > { %v561_v30 = vadd.f32 %v2853_v61, %v550_v28  ;;  %v613_v36 = vadd.f32 %v612_v35, %v611_v33 }
  0xd4   : > { %v2265_v31 = vpop.eup %2264  ;;  %567 = vst.msk [vmem:[#allocation2 + $0x20] sm:$0xff] %vm562_vm2, %v558_v29  ;;  %v579_v32 = vmul.f32 1.442695, %v558_v29  ;;  %s2882_s6 = smax.f32 %s2589_s5, %s607_s30 }
  0xd5   : > { %v2267_v27 = vpop.eup %2266  ;;  %590 = vst.msk [vmem:[#allocation3 + $0x18] sm:$0xff] %vm562_vm2, %v2265_v31  ;;  %v585_v12 = vmul.f32 1.442695, %v561_v30  ;;  %v614_v61 = vsel %vm562_vm2, %v2265_v31, 0.0 }
  0xd6   : > { %2268 = vpow2.f32 %v579_v32  ;;  %593 = vst.msk [vmem:[#allocation3 + $0x30] sm:$0xff] %vm562_vm2, %v2267_v27  ;;  %v615_v40 = vadd.f32 %v614_v61, %v613_v36  ;;  %v620_v55 = vsel %vm562_vm2, %v2267_v27, 0.0 }
  0xd7   : > { %570 = vst.msk [vmem:[#allocation2 + $0x38] sm:$0xff] %vm562_vm2, %v561_v30  ;;  %2270 = vpow2.f32 %v585_v12 }
  0xdc   : > { %v2269_v37 = vpop.eup %2268 }
  0xdd   : > { %v2271_v41 = vpop.eup %2270  ;;  %591 = vst.msk [vmem:[#allocation3 + $0x20] sm:$0xff] %vm562_vm2, %v2269_v37  ;;  %v616_v44 = vsel %vm562_vm2, %v2269_v37, 0.0 }
  0xde   : > { %v617_v47 = vadd.f32 %v616_v44, %v615_v40  ;;  %594 = vst.msk [vmem:[#allocation3 + $0x38] sm:$0xff] %vm562_vm2, %v2271_v41  ;;  %v622_v62 = vsel %vm562_vm2, %v2271_v41, 0.0 }
  0xe0   : > { %v619_v53 = vadd.f32 %v618_v50, %v617_v47 }
  0xe2   : > { %v621_v57 = vadd.f32 %v620_v55, %v619_v53 }
  0xe4   : > { %v623_v2 = vadd.f32 %v622_v62, %v621_v57 }
  0xe6   : > { %v624_v3 = vrot.slane %v623_v2, 4 }
  0xe8   : > { %v625_v4 = vadd.f32 %v624_v3, %v623_v2 }
  0xea   : > { %v626_v5 = vrot.slane %v625_v4, 2 }
  0xec   : > { %v627_v7 = vadd.f32 %v626_v5, %v625_v4 }
  0xee   : > { %v628_v9 = vrot.slane %v627_v7, 1 }
  0xf0   : > { %v629_v10 = vadd.f32 %v628_v9, %v627_v7  }
  0xf1 LB: >> { %2275 = vrcp.f32 %v2545_v10  ;;  %v677_v22 = vand.u32 2147483648, %v2545_v10  ;;  %vm671_vm3 = vweird.f32 %v2545_v10  ;;  %v675_v24 = vand.u32 2147483647, %v2545_v10  ;;  %v2951_v32 = vld [vmem:[#allocation3 + $0x20] sm:$0xff]  ;;  %v2953_v27 = vld [vmem:[#allocation3 + $0x10] sm:$0xff]  ;;  %v2960_v36 = vld [vmem:[#allocation3 + $0x28] sm:$0xff]  ;;  %s2585_s8 = sphi %s2917_s8, %s1349_s8   ;;  %v2581_v18 = vphi %v2915_v18, %v3951_v18   ;;  %v2577_v15 = vphi %v2913_v15, %v3950_v15   ;;  %v2573_v17 = vphi %v2911_v17, %v3949_v17   ;;  %v2569_v14 = vphi %v2909_v14, %v3948_v14   ;;  %v2565_v34 = vphi %v2907_v34, %v3947_v34   ;;  %v2561_v19 = vphi %v2905_v19, %v3946_v19   ;;  %v2557_v13 = vphi %v2903_v13, %v3945_v13   ;;  %v2553_v11 = vphi %v2901_v11, %v3944_v11   ;;  %v2549_v6 = vphi %v2899_v6, %v3943_v6   ;;  %v2545_v10 = vphi %v629_v10, %v3942_v10  }
  0xf2   : >> { %v2955_v16 = vld [vmem:[#allocation3] sm:$0xff]  ;;  %v2962_v37 = vld [vmem:[#allocation3 + $0x18] sm:$0xff]  ;;  %v2967_v47 = vld [vmem:[#allocation3 + $0x8] sm:$0xff] }
  0xf3   : >> { %v678_v28 = vor.u32 1.1754944e-38, %v677_v22  ;;  %vm676_vm6 = vcmp.eq.f32.partialorder %v675_v24, 8.507059e+37  ;;  %v2975_v3 = vld [vmem:[#allocation3 + $0x38] sm:$0xff]  ;;  %v2977_v4 = vld [vmem:[#allocation3 + $0x30] sm:$0xff] }
  0xf7   : >> { %v2276_v20 = vpop.eup %2275 }
  0xf8   : >> { %v667_v21 = vmul.f32 %v2545_v10, %v2276_v20  ;;  %vm672_vm4 = vweird.f32 %v2276_v20 }
  0xf9   : >> { %vm673_vm5 = vmor %vm671_vm3, %vm672_vm4 }
  0xfa   : >> { %v668_v23 = vsub.f32 1.0, %v667_v21 }
  0xfc   : >> { %v669_v26 = vmul.f32 %v2276_v20, %v668_v23 }
  0xfe   : >> { %v670_v29 = vadd.f32 %v2276_v20, %v669_v26 }
 0x100   : >> { %v674_v1 = vsel %vm673_vm5, %v2276_v20, %v670_v29  ;;  %v2590_v20 = vmov 0  }
 0x101   : >> { %v679_v30 = vsel %vm676_vm6, %v678_v28, %v674_v1  ;;  %2274 = vset.pattern.permute.xlu1 %v2590_v20  ;;  %2272 = vset.pattern.permute.xlu2 %v2590_v20 }
 0x102   : >> { %v680_v31 = vmul.f32 %v679_v30, %v2709_v8  ;;  %2273 = vset.pattern.permute.xlu0 %v2590_v20 }
 0x104   : >> { %v682_v12 = vperm.slane %v680_v31, 0 }
 0x106   : >> { %v688_v33 = vmul.f32 %v682_v12, %v2951_v32  ;;  %v686_v61 = vmul.f32 %v682_v12, %v2953_v27  ;;  %v684_v35 = vmul.f32 %v682_v12, %v2955_v16  ;;  %v689_v50 = vmul.f32 %v682_v12, %v2960_v36 }
 0x107   : >> { %v687_v53 = vmul.f32 %v682_v12, %v2962_v37  ;;  %v685_v55 = vmul.f32 %v682_v12, %v2967_v47  ;;  %v691_v5 = vmul.f32 %v682_v12, %v2975_v3  ;;  %v690_v7 = vmul.f32 %v682_v12, %v2977_v4 }
 0x108   : >> { %v704_v40 = vsel %vm562_vm2, %v688_v33, 0.0  ;;  %v698_v41 = vsel %vm562_vm2, %v686_v61, 0.0  ;;  %v692_v44 = vsel %vm562_vm2, %v684_v35, 0.0  ;;  %v707_v57 = vsel %vm562_vm2, %v689_v50, 0.0 }
 0x109   : >> { %705 = vadd.xlane.f32.xlu2 %v704_v40  ;;  %699 = vadd.xlane.f32.xlu1 %v698_v41  ;;  %v701_v62 = vsel %vm562_vm2, %v687_v53, 0.0  ;;  %v695_v2 = vsel %vm562_vm2, %v685_v55, 0.0  ;;  %v713_v9 = vsel %vm562_vm2, %v691_v5, 0.0  ;;  %v710_v10 = vsel %vm562_vm2, %v690_v7, 0.0 }
 0x10a   : >> { %693 = vadd.xlane.f32.xlu0 %v692_v44 }
 0x111   : >> { %708 = vadd.xlane.f32.xlu2 %v707_v57  ;;  %702 = vadd.xlane.f32.xlu1 %v701_v62 }
 0x112   : >> { %696 = vadd.xlane.f32.xlu0 %v695_v2 }
 0x119   : >> { %714 = vadd.xlane.f32.xlu1 %v713_v9 }
 0x11a   : >> { %711 = vadd.xlane.f32.xlu0 %v710_v10 }
 0x17c   : >> { %v2983_v21 = vpop.xlane.xlu2 %705  ;;  %v700_v22 = vpop.xlane.xlu1 %699 }
 0x17d   : >> { %2277 = vrcp.f32 %v2983_v21  ;;  %v694_v23 = vpop.xlane.xlu0 %693  ;;  %v757_v29 = vand.u32 2147483648, %v700_v22  ;;  %v755_v35 = vand.u32 2147483647, %v700_v22  ;;  %vm751_vm7 = vweird.f32 %v700_v22 }
 0x17e   : >> { %2279 = vrcp.f32 %v700_v22  ;;  %v727_v33 = vand.u32 2147483648, %v694_v23  ;;  %v725_v44 = vand.u32 2147483647, %v694_v23  ;;  %vm721_vm8 = vweird.f32 %v694_v23 }
 0x17f   : >> { %2281 = vrcp.f32 %v694_v23  ;;  %v758_v57 = vor.u32 1.1754944e-38, %v757_v29  ;;  %vm3001_vm10 = vcmp.eq.f32.partialorder %v755_v35, 8.507059e+37  ;;  %vm781_vm6 = vweird.f32 %v2983_v21 }
 0x180   : >> { %v728_v7 = vor.u32 1.1754944e-38, %v727_v33  ;;  %vm3006_vm13 = vcmp.eq.f32.partialorder %v725_v44, 8.507059e+37 }
 0x183   : >> { %v2986_v24 = vpop.eup %2277 }
 0x184   : >> { %v2280_v26 = vpop.eup %2279  ;;  %v777_v28 = vmul.f32 %v2986_v24, %v2983_v21  ;;  %v2990_v1 = vpop.xlane.xlu2 %708  ;;  %vm782_vm5 = vweird.f32 %v2986_v24 }
 0x185   : >> { %v2992_v30 = vpop.xlane.xlu1 %702  ;;  %v2282_v31 = vpop.eup %2281  ;;  %v747_v12 = vmul.f32 %v2280_v26, %v700_v22  ;;  %2283 = vrcp.f32 %v2990_v1  ;;  %vm752_vm9 = vweird.f32 %v2280_v26  ;;  %vm796_vm11 = vweird.f32 %v2990_v1 }
 0x186   : >> { %v2995_v61 = vpop.xlane.xlu0 %696  ;;  %v717_v41 = vmul.f32 %v2282_v31, %v694_v23  ;;  %2285 = vrcp.f32 %v2992_v30  ;;  %v778_v53 = vsub.f32 1.0, %v777_v28  ;;  %vm722_vm12 = vweird.f32 %v2282_v31  ;;  %vm3020_vm15 = vmor %vm751_vm7, %vm752_vm9 }
 0x187   : >> { %v748_v50 = vsub.f32 1.0, %v747_v12  ;;  %2287 = vrcp.f32 %v2995_v61  ;;  %v802_v28 = vand.u32 2147483648, %v2990_v1  ;;  %vm766_vm14 = vweird.f32 %v2992_v30  ;;  %vm723_vm3 = vmor %vm721_vm8, %vm722_vm12 }
 0x188   : >> { %v718_v55 = vsub.f32 1.0, %v717_v41  ;;  %v772_v29 = vand.u32 2147483648, %v2992_v30  ;;  %v779_v41 = vmul.f32 %v2986_v24, %v778_v53  ;;  %vm736_vm0 = vweird.f32 %v2995_v61 }
 0x189   : >> { %v749_v2 = vmul.f32 %v2280_v26, %v748_v50  ;;  %v742_v50 = vand.u32 2147483648, %v2995_v61  ;;  %v800_v22 = vand.u32 2147483647, %v2990_v1 }
 0x18a   : >> { %v719_v9 = vmul.f32 %v2282_v31, %v718_v55 }
 0x18b   : >> { %v2284_v20 = vpop.eup %2283  ;;  %v750_v12 = vadd.f32 %v2280_v26, %v749_v2  ;;  %vm801_vm9 = vcmp.eq.f32.partialorder %v800_v22, 8.507059e+37 }
 0x18c   : >> { %v2286_v35 = vpop.eup %2285  ;;  %v792_v33 = vmul.f32 %v2284_v20, %v2990_v1  ;;  %v720_v25 = vadd.f32 %v2282_v31, %v719_v9  ;;  %vm797_vm4 = vweird.f32 %v2284_v20 }
 0x18d   : >> { %v3016_v55 = vpop.xlane.xlu1 %714  ;;  %v2288_v40 = vpop.eup %2287  ;;  %v762_v62 = vmul.f32 %v2286_v35, %v2992_v30  ;;  %v754_v9 = vsel %vm3020_vm15, %v2280_v26, %v750_v12  ;;  %vm767_vm7 = vweird.f32 %v2286_v35  ;;  %vm798_vm8 = vmor %vm796_vm11, %vm797_vm4 }
 0x18e   : >> { %2289 = vrcp.f32 %v3016_v55  ;;  %v3029_v53 = vpop.xlane.xlu0 %711  ;;  %v793_v2 = vsub.f32 1.0, %v792_v33  ;;  %v732_v38 = vmul.f32 %v2288_v40, %v2995_v61  ;;  %v724_v63 = vsel %vm723_vm3, %v2282_v31, %v720_v25  ;;  %vm768_vm12 = vmor %vm766_vm14, %vm767_vm7 }
 0x18f   : >> { %v763_v58 = vsub.f32 1.0, %v762_v62  ;;  %v759_v0 = vsel %vm3001_vm10, %v758_v57, %v754_v9  ;;  %v729_v23 = vsel %vm3006_vm13, %v728_v7, %v724_v63  ;;  %2291 = vrcp.f32 %v3029_v53 }
 0x190   : >> { %v794_v33 = vmul.f32 %v2284_v20, %v793_v2  ;;  %v733_v51 = vsub.f32 1.0, %v732_v38  ;;  %v760_v52 = vmul.f32 %v759_v0, %v2796_v48  ;;  %v730_v26 = vmul.f32 %v729_v23, %v2764_v39 }
 0x191   : >> { %v764_v25 = vmul.f32 %v2286_v35, %v763_v58  ;;  %v803_v31 = vor.u32 1.1754944e-38, %v802_v28  ;;  %v770_v62 = vand.u32 2147483647, %v2992_v30  ;;  %v773_v63 = vor.u32 1.1754944e-38, %v772_v29 }
 0x192   : >> { %v734_v5 = vmul.f32 %v2288_v40, %v733_v51  ;;  %848 = vperm.xlu1 %2274, %v760_v52   ;;  %838 = vperm.xlu2 %2272, %v730_v26   ;;  %v795_v57 = vadd.f32 %v2284_v20, %v794_v33  ;;  %v740_v7 = vand.u32 2147483647, %v2995_v61  ;;  %vm737_vm10 = vweird.f32 %v2288_v40 }
 0x193   : >> { %v765_v0 = vadd.f32 %v2286_v35, %v764_v25  ;;  %v743_v58 = vor.u32 1.1754944e-38, %v742_v50  ;;  %v780_v52 = vadd.f32 %v2986_v24, %v779_v41  ;;  %v832_v12 = vand.u32 2147483648, %v3016_v55  ;;  %vm738_vm13 = vmor %vm736_vm0, %vm737_vm10 }
 0x194   : >> { %v2290_v10 = vpop.eup %2289  ;;  %v799_v28 = vsel %vm798_vm8, %v2284_v20, %v795_v57  ;;  %v735_v51 = vadd.f32 %v2288_v40, %v734_v5  ;;  %vm771_vm11 = vcmp.eq.f32.partialorder %v770_v62, 8.507059e+37  ;;  %vm741_vm14 = vcmp.eq.f32.partialorder %v740_v7, 8.507059e+37  ;;  %vm3069_vm0 = vmor %vm781_vm6, %vm782_vm5 }
 0x195   : >> { %v822_v38 = vmul.f32 %v2290_v10, %v3016_v55  ;;  %v2292_v29 = vpop.eup %2291  ;;  %v804_v44 = vsel %vm801_vm9, %v803_v31, %v799_v28  ;;  %v769_v1 = vsel %vm768_vm12, %v2286_v35, %v765_v0  ;;  %v830_v41 = vand.u32 2147483647, %v3016_v55 }
 0x196   : >> { %v807_v2 = vmul.f32 %v2292_v29, %v3029_v53  ;;  %v805_v50 = vmul.f32 %v804_v44, %v2818_v56  ;;  %v774_v9 = vsel %vm771_vm11, %v773_v63, %v769_v1  ;;  %v739_v20 = vsel %vm738_vm13, %v2288_v40, %v735_v51 }
 0x197   : >> { %v823_v22 = vsub.f32 1.0, %v822_v38  ;;  %v775_v30 = vmul.f32 %v774_v9, %v2781_v43  ;;  %v744_v35 = vsel %vm741_vm14, %v743_v58, %v739_v20  ;;  %vm827_vm15 = vweird.f32 %v2290_v10 }
 0x198   : >> { %v808_v33 = vsub.f32 1.0, %v807_v2  ;;  %vm826_vm3 = vweird.f32 %v3016_v55  ;;  %vm811_vm4 = vweird.f32 %v3029_v53  ;;  %v745_v26 = vmul.f32 %v744_v35, %v2778_v42 }
 0x199   : >> { %v824_v23 = vmul.f32 %v2290_v10, %v823_v22  ;;  %v784_v55 = vsel %vm3069_vm0, %v2986_v24, %v780_v52  ;;  %vm812_vm7 = vweird.f32 %v2292_v29  ;;  %v817_v31 = vand.u32 2147483648, %v3029_v53  ;;  %vm828_vm8 = vmor %vm826_vm3, %vm827_vm15 }
 0x19a   : >> { %v809_v40 = vmul.f32 %v2292_v29, %v808_v33  ;;  %863 = vperm.xlu1 %2274, %v805_v50   ;;  %853 = vperm.xlu2 %2272, %v775_v30   ;;  %v833_v62 = vor.u32 1.1754944e-38, %v832_v12  ;;  %v3905_v5 = vand.u32 2147483647, %v2983_v21  ;;  %v3906_v57 = vand.u32 2147483648, %v2983_v21  ;;  %vm813_vm9 = vmor %vm811_vm4, %vm812_vm7 }
 0x19b   : >> { %v825_v25 = vadd.f32 %v2290_v10, %v824_v23  ;;  %843 = vperm.xlu0 %2273, %v745_v26   ;;  %vm831_vm6 = vcmp.eq.f32.partialorder %v830_v41, 8.507059e+37  ;;  %v815_v58 = vand.u32 2147483647, %v3029_v53  ;;  %v818_v51 = vor.u32 1.1754944e-38, %v817_v31 }
 0x19c   : >> { %vm786_vm5 = vcmp.eq.f32.partialorder %v3905_v5, 8.507059e+37  ;;  %v788_v63 = vor.u32 1.1754944e-38, %v3906_v57  ;;  %v810_v0 = vadd.f32 %v2292_v29, %v809_v40 }
 0x19d   : >> { %v829_v7 = vsel %vm828_vm8, %v2290_v10, %v825_v25  ;;  %vm816_vm10 = vcmp.eq.f32.partialorder %v815_v58, 8.507059e+37 }
 0x19e   : >> { %v834_v38 = vsel %vm831_vm6, %v833_v62, %v829_v7  ;;  %v789_v28 = vsel %vm786_vm5, %v788_v63, %v784_v55  ;;  %v814_v12 = vsel %vm813_vm9, %v2292_v29, %v810_v0 }
 0x19f   : >> { %v835_v24 = vmul.f32 %v834_v38, %v2793_v46  ;;  %v790_v52 = vmul.f32 %v789_v28, %v2800_v49  ;;  %v819_v21 = vsel %vm816_vm10, %v818_v51, %v814_v12 }
 0x1a0   : >> { %v820_v10 = vmul.f32 %v819_v21, %v2814_v54 }
 0x1a2   : >> { %873 = vperm.xlu1 %2274, %v835_v24   ;;  %858 = vperm.xlu2 %2272, %v790_v52  }
 0x1aa   : >> { %868 = vperm.xlu2 %2272, %v820_v10  }
 0x1ec   : >> { %v839_v44 = vpop.permute.xlu2 %838 }
 0x1ed   : >> { %v876_v53 = vmul.f32 %v839_v44, %v2955_v16 }
 0x1ef   : >> { %v884_v29 = vsel %vm562_vm2, %v876_v53, 0.0 }
 0x1f4   : >> { %v854_v1 = vpop.permute.xlu2 %853 }
 0x1f5   : >> { %v879_v41 = vmul.f32 %v854_v1, %v2962_v37 }
 0x1f7   : >> { %v889_v25 = vsel %vm562_vm2, %v879_v41, 0.0 }
 0x1fc   : >> { %v859_v2 = vpop.permute.xlu2 %858 }
 0x1fd   : >> { %v880_v35 = vmul.f32 %v859_v2, %v2951_v32 }
 0x1ff   : >> { %v891_v5 = vsel %vm562_vm2, %v880_v35, 0.0 }
 0x204   : >> { %v849_v22 = vpop.permute.xlu1 %848  ;;  %v869_v61 = vpop.permute.xlu2 %868 }
 0x205   : >> { %v878_v30 = vmul.f32 %v849_v22, %v2953_v27  ;;  %v882_v57 = vmul.f32 %v869_v61, %v2977_v4 }
 0x207   : >> { %v887_v26 = vsel %vm562_vm2, %v878_v30, 0.0  ;;  %v895_v38 = vsel %vm562_vm2, %v882_v57, 0.0 }
 0x20c   : >> { %v864_v50 = vpop.permute.xlu1 %863 }
 0x20d   : >> { %v844_v9 = vpop.permute.xlu0 %843  ;;  %v881_v55 = vmul.f32 %v864_v50, %v2960_v36 }
 0x20e   : >> { %v877_v20 = vmul.f32 %v844_v9, %v2967_v47 }
 0x20f   : >> { %v893_v7 = vsel %vm562_vm2, %v881_v55, 0.0 }
 0x210   : >> { %v885_v23 = vsel %vm562_vm2, %v877_v20, 0.0 }
 0x211   : >> { %v886_v33 = vadd.f32 %v885_v23, %v884_v29 }
 0x213   : >> { %v888_v40 = vadd.f32 %v887_v26, %v886_v33 }
 0x214   : >> { %v874_v62 = vpop.permute.xlu1 %873 }
 0x215   : >> { %v890_v31 = vadd.f32 %v889_v25, %v888_v40  ;;  %v883_v0 = vmul.f32 %v874_v62, %v2975_v3 }
 0x217   : >> { %v892_v63 = vadd.f32 %v891_v5, %v890_v31  ;;  %v897_v24 = vsel %vm562_vm2, %v883_v0, 0.0 }
 0x219   : >> { %v894_v58 = vadd.f32 %v893_v7, %v892_v63 }
 0x21b   : >> { %v896_v28 = vadd.f32 %v895_v38, %v894_v58 }
 0x21d   : >> { %v898_v51 = vadd.f32 %v897_v24, %v896_v28 }
 0x21f   : >> { %v899_v52 = vrot.slane %v898_v51, 4 }
 0x221   : >> { %v900_v12 = vadd.f32 %v899_v52, %v898_v51 }
 0x223   : >> { %v901_v21 = vrot.slane %v900_v12, 2 }
 0x225   : >> { %v902_v10 = vadd.f32 %v901_v21, %v900_v12 }
 0x227   : >> { %v903_v44 = vrot.slane %v902_v10, 1 }
 0x229   : >> { %v904_v1 = vadd.f32 %v903_v44, %v902_v10 }
 0x22b   : >> { %2293 = vrcp.f32 %v904_v1  ;;  %v916_v50 = vand.u32 2147483648, %v904_v1  ;;  %v914_v30 = vand.u32 2147483647, %v904_v1  ;;  %vm910_vm11 = vweird.f32 %v904_v1 }
 0x22d   : >> { %v917_v29 = vor.u32 1.1754944e-38, %v916_v50  ;;  %vm915_vm14 = vcmp.eq.f32.partialorder %v914_v30, 8.507059e+37 }
 0x231   : >> { %v2294_v22 = vpop.eup %2293 }
 0x232   : >> { %v906_v2 = vmul.f32 %v2294_v22, %v904_v1  ;;  %vm911_vm12 = vweird.f32 %v2294_v22 }
 0x233   : >> { %vm912_vm13 = vmor %vm910_vm11, %vm911_vm12 }
 0x234   : >> { %v907_v53 = vsub.f32 1.0, %v906_v2 }
 0x236   : >> { %v908_v9 = vmul.f32 %v2294_v22, %v907_v53 }
 0x238   : >> { %v909_v20 = vadd.f32 %v2294_v22, %v908_v9 }
 0x23a   : >> { %v913_v41 = vsel %vm912_vm13, %v2294_v22, %v909_v20 }
 0x23b   : >> { %v918_v23 = vsel %vm915_vm14, %v917_v29, %v913_v41 }
 0x23c   : >> { %v3104_v33 = vmul.f32 %v918_v23, %v2709_v8 }
 0x23e   : >> { %v921_v35 = vperm.slane %v3104_v33, 0 }
 0x240   : >> { %v925_v26 = vmul.f32 %v921_v35, %v2953_v27  ;;  %v924_v61 = vmul.f32 %v921_v35, %v2967_v47  ;;  %v923_v40 = vmul.f32 %v921_v35, %v2955_v16  ;;  %v928_v62 = vmul.f32 %v921_v35, %v2960_v36 }
 0x241   : >> { %v926_v5 = vmul.f32 %v921_v35, %v2962_v37  ;;  %v927_v57 = vmul.f32 %v921_v35, %v2951_v32  ;;  %v929_v58 = vmul.f32 %v921_v35, %v2977_v4  ;;  %v930_v38 = vmul.f32 %v921_v35, %v2975_v3 }
 0x242   : >> { %v937_v25 = vsel %vm562_vm2, %v925_v26, 0.0  ;;  %v934_v55 = vsel %vm562_vm2, %v924_v61, 0.0  ;;  %v931_v31 = vsel %vm562_vm2, %v923_v40, 0.0  ;;  %v946_v63 = vsel %vm562_vm2, %v928_v62, 0.0 }
 0x243   : >> { %938 = vadd.xlane.f32.xlu1 %v937_v25  ;;  %935 = vadd.xlane.f32.xlu2 %v934_v55  ;;  %v940_v7 = vsel %vm562_vm2, %v926_v5, 0.0  ;;  %v943_v0 = vsel %vm562_vm2, %v927_v57, 0.0  ;;  %v949_v28 = vsel %vm562_vm2, %v929_v58, 0.0  ;;  %v952_v24 = vsel %vm562_vm2, %v930_v38, 0.0 }
 0x244   : >> { %932 = vadd.xlane.f32.xlu0 %v931_v31 }
 0x24b   : >> { %947 = vadd.xlane.f32.xlu1 %v946_v63  ;;  %941 = vadd.xlane.f32.xlu2 %v940_v7 }
 0x24c   : >> { %944 = vadd.xlane.f32.xlu0 %v943_v0 }
 0x253   : >> { %950 = vadd.xlane.f32.xlu2 %v949_v28 }
 0x254   : >> { %953 = vadd.xlane.f32.xlu0 %v952_v24 }
 0x2b6   : >> { %v939_v51 = vpop.xlane.xlu1 %938  ;;  %v3123_v52 = vpop.xlane.xlu2 %935 }
 0x2b7   : >> { %2295 = vrcp.f32 %v939_v51  ;;  %v3125_v12 = vpop.xlane.xlu0 %932  ;;  %v994_v53 = vand.u32 2147483647, %v939_v51  ;;  %v996_v20 = vand.u32 2147483648, %v939_v51  ;;  %v979_v29 = vand.u32 2147483647, %v3123_v52 }
 0x2b8   : >> { %2297 = vrcp.f32 %v3123_v52  ;;  %v981_v35 = vand.u32 2147483648, %v3123_v52  ;;  %v966_v26 = vand.u32 2147483648, %v3125_v12  ;;  %v964_v25 = vand.u32 2147483647, %v3125_v12 }
 0x2b9   : >> { %2299 = vrcp.f32 %v3125_v12  ;;  %vm990_vm15 = vweird.f32 %v939_v51  ;;  %vm975_vm3 = vweird.f32 %v3123_v52  ;;  %vm3155_vm4 = vcmp.eq.f32.partialorder %v994_v53, 8.507059e+37 }
 0x2ba   : >> { %v997_v31 = vor.u32 1.1754944e-38, %v996_v20  ;;  %vm3160_vm0 = vcmp.eq.f32.partialorder %v979_v29, 8.507059e+37  ;;  %vm960_vm7 = vweird.f32 %v3125_v12  ;;  %v982_v63 = vor.u32 1.1754944e-38, %v981_v35 }
 0x2bb   : >> { %v967_v0 = vor.u32 1.1754944e-38, %v966_v26  ;;  %vm3172_vm6 = vcmp.eq.f32.partialorder %v964_v25, 8.507059e+37 }
 0x2bd   : >> { %v3129_v21 = vpop.eup %2295 }
 0x2be   : >> { %v3131_v10 = vpop.eup %2297  ;;  %v986_v44 = vmul.f32 %v3129_v21, %v939_v51  ;;  %v3134_v1 = vpop.xlane.xlu1 %947  ;;  %vm991_vm8 = vweird.f32 %v3129_v21 }
 0x2bf   : >> { %v3136_v22 = vpop.xlane.xlu2 %941  ;;  %v3138_v2 = vpop.eup %2299  ;;  %v971_v50 = vmul.f32 %v3131_v10, %v3123_v52  ;;  %2301 = vrcp.f32 %v3134_v1  ;;  %v1039_v58 = vand.u32 2147483647, %v3134_v1  ;;  %vm976_vm5 = vweird.f32 %v3131_v10  ;;  %vm3197_vm11 = vmor %vm990_vm15, %vm991_vm8 }
 0x2c0   : >> { %v3143_v9 = vpop.xlane.xlu0 %944  ;;  %v987_v30 = vsub.f32 1.0, %v986_v44  ;;  %v956_v41 = vmul.f32 %v3138_v2, %v3125_v12  ;;  %2303 = vrcp.f32 %v3136_v22  ;;  %vm961_vm9 = vweird.f32 %v3138_v2  ;;  %vm977_vm14 = vmor %vm975_vm3, %vm976_vm5 }
 0x2c1   : >> { %v972_v23 = vsub.f32 1.0, %v971_v50  ;;  %2305 = vrcp.f32 %v3143_v9  ;;  %vm1035_vm10 = vweird.f32 %v3134_v1  ;;  %v1041_v50 = vand.u32 2147483648, %v3134_v1  ;;  %vm3226_vm8 = vmor %vm960_vm7, %vm961_vm9 }
 0x2c2   : >> { %v988_v61 = vmul.f32 %v3129_v21, %v987_v30  ;;  %v957_v40 = vsub.f32 1.0, %v956_v41  ;;  %vm1005_vm12 = vweird.f32 %v3136_v22  ;;  %vm3202_vm13 = vcmp.eq.f32.partialorder %v1039_v58, 8.507059e+37 }
 0x2c3   : >> { %v973_v62 = vmul.f32 %v3131_v10, %v972_v23  ;;  %v1024_v58 = vand.u32 2147483647, %v3143_v9 }
 0x2c4   : >> { %v958_v7 = vmul.f32 %v3138_v2, %v957_v40  ;;  %v989_v38 = vadd.f32 %v3129_v21, %v988_v61  ;;  %v1009_v40 = vand.u32 2147483647, %v3136_v22 }
 0x2c5   : >> { %v3165_v57 = vpop.eup %2301  ;;  %v974_v20 = vadd.f32 %v3131_v10, %v973_v62 }
 0x2c6   : >> { %v1031_v24 = vmul.f32 %v3165_v57, %v3134_v1  ;;  %v3180_v53 = vpop.eup %2303  ;;  %v959_v26 = vadd.f32 %v3138_v2, %v958_v7  ;;  %vm1036_vm15 = vweird.f32 %v3165_v57  ;;  %v1011_v7 = vand.u32 2147483648, %v3136_v22 }
 0x2c7   : >> { %v3178_v44 = vpop.xlane.xlu2 %950  ;;  %v1001_v41 = vmul.f32 %v3180_v53, %v3136_v22  ;;  %v3192_v23 = vpop.eup %2305  ;;  %v978_v35 = vsel %vm977_vm14, %v3131_v10, %v974_v20  ;;  %vm1006_vm3 = vweird.f32 %v3180_v53  ;;  %vm3245_vm7 = vmor %vm1035_vm10, %vm1036_vm15  ;;  %vm1025_vm10 = vcmp.eq.f32.partialorder %v1024_v58, 8.507059e+37 }
 0x2c8   : >> { %2307 = vrcp.f32 %v3178_v44  ;;  %v3186_v30 = vpop.xlane.xlu0 %953  ;;  %v1032_v29 = vsub.f32 1.0, %v1031_v24  ;;  %v1016_v51 = vmul.f32 %v3192_v23, %v3143_v9  ;;  %v993_v24 = vsel %vm3197_vm11, %v3129_v21, %v989_v38 }
 0x2c9   : >> { %2309 = vrcp.f32 %v3186_v30  ;;  %v1002_v62 = vsub.f32 1.0, %v1001_v41  ;;  %v983_v45 = vsel %vm3160_vm0, %v982_v63, %v978_v35  ;;  %v998_v12 = vsel %vm3155_vm4, %v997_v31, %v993_v24  ;;  %vm3269_vm4 = vmor %vm1005_vm12, %vm1006_vm3 }
 0x2ca   : >> { %v1033_v25 = vmul.f32 %v3165_v57, %v1032_v29  ;;  %v1026_v29 = vand.u32 2147483648, %v3143_v9  ;;  %v1017_v38 = vsub.f32 1.0, %v1016_v51  ;;  %v963_v59 = vsel %vm3226_vm8, %v3138_v2, %v959_v26 }
 0x2cb   : >> { %v1003_v52 = vmul.f32 %v3180_v53, %v1002_v62  ;;  %vm1021_vm5 = vweird.f32 %v3192_v23  ;;  %v3255_v5 = vmul.f32 %v983_v45, %v2778_v42  ;;  %v3258_v2 = vmul.f32 %v998_v12, %v2796_v48 }
 0x2cc   : >> { %v1034_v21 = vadd.f32 %v3165_v57, %v1033_v25  ;;  %v1018_v20 = vmul.f32 %v3192_v23, %v1017_v38  ;;  %v968_v1 = vsel %vm3172_vm6, %v967_v0, %v963_v59  ;;  %v1042_v26 = vor.u32 1.1754944e-38, %v1041_v50 }
 0x2cd   : >> { %v1004_v10 = vadd.f32 %v3180_v53, %v1003_v52  ;;  %vm3275_vm0 = vcmp.eq.f32.partialorder %v1009_v40, 8.507059e+37  ;;  %vm1020_vm6 = vweird.f32 %v3143_v9  ;;  %1082 = vperm.xlu2 %2272, %v3255_v5   ;;  %1087 = vperm.xlu0 %2273, %v3258_v2   ;;  %v3283_v22 = vmul.f32 %v968_v1, %v2764_v39 }
 0x2ce   : >> { %v3233_v60 = vpop.eup %2307  ;;  %v1038_v63 = vsel %vm3245_vm7, %v3165_v57, %v1034_v21  ;;  %v1019_v45 = vadd.f32 %v3192_v23, %v1018_v20  ;;  %v1012_v0 = vor.u32 1.1754944e-38, %v1011_v7  ;;  %vm3290_vm9 = vmor %vm1020_vm6, %vm1021_vm5  ;;  %v1027_v41 = vor.u32 1.1754944e-38, %v1026_v29 }
 0x2cf   : >> { %v1046_v55 = vmul.f32 %v3233_v60, %v3178_v44  ;;  %v2310_v31 = vpop.eup %2309  ;;  %v1008_v57 = vsel %vm3269_vm4, %v3180_v53, %v1004_v10  ;;  %v1043_v40 = vsel %vm3202_vm13, %v1042_v26, %v1038_v63  ;;  %v1069_v21 = vand.u32 2147483647, %v3186_v30  ;;  %1077 = vperm.xlu1 %2274, %v3283_v22  }
 0x2d0   : >> { %v1061_v24 = vmul.f32 %v2310_v31, %v3186_v30  ;;  %v1023_v53 = vsel %vm3290_vm9, %v3192_v23, %v1019_v45  ;;  %vm1066_vm12 = vweird.f32 %v2310_v31  ;;  %v1071_v52 = vand.u32 2147483648, %v3186_v30 }
 0x2d1   : >> { %v1047_v51 = vsub.f32 1.0, %v1046_v55  ;;  %v1013_v38 = vsel %vm3275_vm0, %v1012_v0, %v1008_v57  ;;  %vm1051_vm11 = vweird.f32 %v3233_v60  ;;  %v3308_v58 = vmul.f32 %v1043_v40, %v2818_v56 }
 0x2d2   : >> { %v1062_v50 = vsub.f32 1.0, %v1061_v24  ;;  %v1028_v29 = vsel %vm1025_vm10, %v1027_v41, %v1023_v53  ;;  %v1056_v35 = vand.u32 2147483648, %v3178_v44  ;;  %vm1065_vm13 = vweird.f32 %v3186_v30 }
 0x2d3   : >> { %v1048_v9 = vmul.f32 %v3233_v60, %v1047_v51  ;;  %v3313_v23 = vmul.f32 %v1028_v29, %v2800_v49  ;;  %vm1050_vm14 = vweird.f32 %v3178_v44  ;;  %v1054_v25 = vand.u32 2147483647, %v3178_v44  ;;  %vm1067_vm15 = vmor %vm1065_vm13, %vm1066_vm12 }
 0x2d4   : >> { %v1063_v7 = vmul.f32 %v2310_v31, %v1062_v50  ;;  %v3318_v10 = vmul.f32 %v1013_v38, %v2781_v43  ;;  %vm1052_vm8 = vmor %vm1050_vm14, %vm1051_vm11  ;;  %v1072_v55 = vor.u32 1.1754944e-38, %v1071_v52  ;;  %vm1070_vm3 = vcmp.eq.f32.partialorder %v1069_v21, 8.507059e+37 }
 0x2d5   : >> { %v1049_v61 = vadd.f32 %v3233_v60, %v1048_v9  ;;  %1102 = vperm.xlu2 %2272, %v3308_v58   ;;  %1097 = vperm.xlu0 %2273, %v3313_v23   ;;  %v1057_v63 = vor.u32 1.1754944e-38, %v1056_v35  ;;  %vm1055_vm7 = vcmp.eq.f32.partialorder %v1054_v25, 8.507059e+37  ;;  %v1160_v51 = vand.u32 2147483647, %v3258_v2 }
 0x2d6   : >> { %v1064_v12 = vadd.f32 %v2310_v31, %v1063_v7  ;;  %v3927_v20 = vmov %v3318_v10  ;;  %v1162_v59 = vand.u32 2147483647, %v3313_v23  ;;  %v1163_v57 = vand.u32 2147483647, %v3308_v58 }
 0x2d7   : >> { %v1053_v30 = vsel %vm1052_vm8, %v3233_v60, %v1049_v61  ;;  %1092 = vperm.xlu1 %2274, %v3927_v20   ;;  %v1161_v24 = vand.u32 2147483647, %v3927_v20  ;;  %vm1166_vm5 = vcmask 7168   ;;  %v1158_v0 = vand.u32 2147483647, %v3283_v22 }
 0x2d8   : >> { %v1068_v1 = vsel %vm1067_vm15, %v2310_v31, %v1064_v12  ;;  %v1058_v44 = vsel %vm1055_vm7, %v1057_v63, %v1053_v30  ;;  %v1159_v28 = vand.u32 2147483647, %v3255_v5  ;;  %v1169_v40 = vsel %vm1166_vm5, %v1160_v51, -inf }
 0x2d9   : >> { %v1073_v26 = vsel %vm1070_vm3, %v1072_v55, %v1068_v1  ;;  %v3328_v45 = vmul.f32 %v1058_v44, %v2814_v54  ;;  %v1170_v41 = vsel %vm1166_vm5, %v1161_v24, -inf  ;;  %v1171_v21 = vsel %vm1166_vm5, %v1162_v59, -inf }
 0x2da   : >> { %v3325_v62 = vmul.f32 %v1073_v26, %v2793_v46  ;;  %v1173_v53 = vsel %vm1166_vm5, %v1163_v57, -inf  ;;  %v1167_v38 = vsel %vm1166_vm5, %v1158_v0, -inf  ;;  %v1168_v61 = vsel %vm1166_vm5, %v1159_v28, -inf }
 0x2db   : >> { %v1164_v31 = vand.u32 2147483647, %v3328_v45  ;;  %v1172_v29 = vmax.f32 %v1167_v38, %v1171_v21  ;;  %v1174_v35 = vmax.f32 %v1168_v61, %v1173_v53  ;;  %v1191_v12 = vand.u32 2147483647, %v3104_v33 }
 0x2dc   : >> { %v1165_v60 = vand.u32 2147483647, %v3325_v62  ;;  %2311 = vlog2.f32 %v3104_v33 }
 0x2dd   : >> { %1112 = vperm.xlu0 %2273, %v3325_v62   ;;  %v1175_v9 = vsel %vm1166_vm5, %v1164_v31, -inf  ;;  %v1179_v10 = vmax.f32 %v1172_v29, %v1174_v35  ;;  %v1192_v55 = vsel %vm596_vm1, %v1191_v12, -inf  ;;  %2313 = vlog2.f32 %v3255_v5 }
 0x2de   : >> { %v1177_v50 = vsel %vm1166_vm5, %v1165_v60, -inf  ;;  %v1176_v7 = vmax.f32 %v1169_v40, %v1175_v9  ;;  %2315 = vlog2.f32 %v3258_v2 }
 0x2df   : >> { %1107 = vperm.xlu1 %2274, %v3328_v45   ;;  %v1178_v52 = vmax.f32 %v1170_v41, %v1177_v50  ;;  %2317 = vlog2.f32 %v3283_v22 }
 0x2e0   : >> { %2319 = vlog2.f32 %v3308_v58 }
 0x2e1   : >> { %v1180_v25 = vmax.f32 %v1176_v7, %v1178_v52  ;;  %2321 = vlog2.f32 %v3927_v20 }
 0x2e2   : >> { %2323 = vlog2.f32 %v3313_v23 }
 0x2e3   : >> { %v1181_v1 = vmax.f32 %v1179_v10, %v1180_v25  ;;  %2325 = vlog2.f32 %v3328_v45 }
 0x2e4   : >> { %2327 = vlog2.f32 %v3325_v62 }
 0x307   : >> { %1193 = vmax.xlane.f32.xlu0 %v1192_v55 }
 0x309   : >> { %1182 = vmax.xlane.f32.xlu1 %v1181_v1 }
 0x327   : >> { %v1083_v30 = vpop.permute.xlu2 %1082 }
 0x328   : >> { %v1116_v44 = vmul.f32 %v1083_v30, %v2967_v47 }
 0x32a   : >> { %v1124_v51 = vsel %vm562_vm2, %v1116_v44, 0.0 }
 0x32f   : >> { %v1103_v40 = vpop.permute.xlu2 %1102 }
 0x330   : >> { %v1120_v21 = vmul.f32 %v1103_v40, %v2960_v36 }
 0x332   : >> { %v1132_v38 = vsel %vm562_vm2, %v1120_v21, 0.0 }
 0x33f   : >> { %v1088_v63 = vpop.permute.xlu0 %1087 }
 0x340   : >> { %v1117_v24 = vmul.f32 %v1088_v63, %v2953_v27 }
 0x341   : >> { %v1078_v26 = vpop.permute.xlu1 %1077 }
 0x342   : >> { %v1115_v31 = vmul.f32 %v1078_v26, %v2955_v16  ;;  %v1126_v28 = vsel %vm562_vm2, %v1117_v24, 0.0 }
 0x344   : >> { %v1123_v60 = vsel %vm562_vm2, %v1115_v31, 0.0 }
 0x345   : >> { %v1125_v59 = vadd.f32 %v1124_v51, %v1123_v60 }
 0x347   : >> { %v1098_v57 = vpop.permute.xlu0 %1097  ;;  %v1127_v41 = vadd.f32 %v1126_v28, %v1125_v59 }
 0x348   : >> { %v1119_v50 = vmul.f32 %v1098_v57, %v2951_v32 }
 0x349   : >> { %v1093_v0 = vpop.permute.xlu1 %1092 }
 0x34a   : >> { %v1118_v9 = vmul.f32 %v1093_v0, %v2962_v37  ;;  %v1130_v53 = vsel %vm562_vm2, %v1119_v50, 0.0 }
 0x34c   : >> { %v1128_v47 = vsel %vm562_vm2, %v1118_v9, 0.0 }
 0x34d   : >> { %v1129_v16 = vadd.f32 %v1128_v47, %v1127_v41 }
 0x34f   : >> { %v1131_v7 = vadd.f32 %v1130_v53, %v1129_v16  ;;  %v1113_v27 = vpop.permute.xlu0 %1112 }
 0x350   : >> { %v1122_v37 = vmul.f32 %v1113_v27, %v2975_v3 }
 0x351   : >> { %v1108_v52 = vpop.permute.xlu1 %1107  ;;  %v1133_v29 = vadd.f32 %v1132_v38, %v1131_v7 }
 0x352   : >> { %v1121_v61 = vmul.f32 %v1108_v52, %v2977_v4  ;;  %v1136_v12 = vsel %vm562_vm2, %v1122_v37, 0.0 }
 0x354   : >> { %v1134_v32 = vsel %vm562_vm2, %v1121_v61, 0.0  ;;  %v2312_v61 = vpop.eup %2311 }
 0x355   : >> { %v1135_v35 = vadd.f32 %v1134_v32, %v1133_v29  ;;  %v2314_v37 = vpop.eup %2313 }
 0x356   : >> { %v2316_v29 = vpop.eup %2315 }
 0x357   : >> { %v1137_v25 = vadd.f32 %v1136_v12, %v1135_v35  ;;  %v2318_v32 = vpop.eup %2317 }
 0x358   : >> { %v2320_v35 = vpop.eup %2319 }
 0x359   : >> { %v1138_v10 = vrot.slane %v1137_v25, 4  ;;  %v2322_v12 = vpop.eup %2321 }
 0x35b   : >> { %v1139_v36 = vadd.f32 %v1138_v10, %v1137_v25  ;;  %v2324_v25 = vpop.eup %2323 }
 0x35d   : >> { %v1140_v55 = vrot.slane %v1139_v36, 2 }
 0x35f   : >> { %v1141_v1 = vadd.f32 %v1140_v55, %v1139_v36  ;;  %v2326_v36 = vpop.eup %2325  ;;  %v1243_v55 = vmul.f32 0.6931472, %v2312_v61 }
 0x361   : >> { %v1142_v30 = vrot.slane %v1141_v1, 1 }
 0x363   : >> { %v3366_v10 = vadd.f32 %v1142_v30, %v1141_v1  ;;  %v2328_v1 = vpop.eup %2327  ;;  %v1210_v30 = vmul.f32 0.6931472, %v2314_v37 }
 0x365   : >> { %v3370_v63 = vmul.f32 %v3366_v10, %v3104_v33 }
 0x367   : >> { %v1145_v3 = vsub.f32 %v3370_v63, %v2709_v8 }
 0x369   : >> { %v1146_v4 = vand.u32 2147483647, %v1145_v3  ;;  %v1212_v3 = vmul.f32 0.6931472, %v2316_v29 }
 0x36b   : >> { %v1147_v26 = vsel %vm596_vm1, %v1146_v4, -inf  ;;  %v1208_v4 = vmul.f32 0.6931472, %v2318_v32 }
 0x36c   : >> { %1148 = vmax.xlane.f32.xlu2 %v1147_v26  ;;  %v1218_v26 = vmul.f32 0.6931472, %v2320_v35 }
 0x37a   : >> { %v1194_v31 = vpop.xlane.xlu0 %1193 }
 0x37b   : >> { %v1195_v51 = vrot.slane %v1194_v31, 4 }
 0x37c   : >> { %v1183_v44 = vpop.xlane.xlu1 %1182 }
 0x37d   : >> { %v1184_v60 = vrot.slane %v1183_v44, 4  ;;  %v1196_v59 = vmax.f32 %v1194_v31, %v1195_v51  ;;  %v1216_v31 = vmul.f32 0.6931472, %v2324_v25  ;;  %v1222_v51 = vmul.f32 0.6931472, %v2328_v1 }
 0x37f   : >> { %v1185_v24 = vmax.f32 %v1183_v44, %v1184_v60  ;;  %v1197_v28 = vrot.slane %v1196_v59, 2  ;;  %v1214_v44 = vmul.f32 0.6931472, %v2322_v12  ;;  %v1220_v60 = vmul.f32 0.6931472, %v2326_v36 }
 0x381   : >> { %v1186_v57 = vrot.slane %v1185_v24, 2  ;;  %v1198_v41 = vmax.f32 %v1196_v59, %v1197_v28  ;;  %v1224_v59 = vsub.f32 %v2577_v15, %v1210_v30  ;;  %v1228_v28 = vsub.f32 %v2561_v19, %v1218_v26 }
 0x383   : >> { %v1187_v40 = vmax.f32 %v1185_v24, %v1186_v57  ;;  %v1199_v7 = vrot.slane %v1198_v41, 1  ;;  %v1244_v24 = vsub.f32 %v2549_v6, %v1243_v55  ;;  %v1225_v57 = vsub.f32 %v2573_v17, %v1212_v3 }
 0x385   : >> { %v1188_v21 = vrot.slane %v1187_v40, 1  ;;  %v1200_v38 = vmax.f32 %v1198_v41, %v1199_v7  ;;  %v1229_v41 = vsub.f32 %v2557_v13, %v1220_v60 }
 0x387   : >> { %v1189_v52 = vmax.f32 %v1187_v40, %v1188_v21  ;;  %v1227_v40 = vsub.f32 %v2565_v34, %v1216_v31 }
 0x3df   : >> { %v1149_v0 = vpop.xlane.xlu2 %1148 }
 0x3e0   : >> { %v1150_v9 = vrot.slane %v1149_v0, 4 }
 0x3e2   : >> { %v1151_v50 = vmax.f32 %v1149_v0, %v1150_v9  ;;  %v1223_v0 = vsub.f32 %v2581_v18, %v1208_v4  ;;  %v1226_v9 = vsub.f32 %v2569_v14, %v1214_v44 }
 0x3e4   : >> { %v1152_v47 = vrot.slane %v1151_v50, 2 }
 0x3e6   : >> { %v1153_v16 = vmax.f32 %v1151_v50, %v1152_v47  ;;  %v1230_v47 = vsub.f32 %v2553_v11, %v1222_v51 }
 0x3e8   : >> { %v1154_v53 = vrot.slane %v1153_v16, 1 }
 0x3ea   : >> { %v1155_v27 = vmax.f32 %v1153_v16, %v1154_v53 }
 0x3ec   : >> { %2091 = vpush %v1155_v27 }
 0x3ed   : >> { %2093 = vpush %v1189_v52 }
 0x3ee   : >> { %2095 = vpush %v1200_v38 }
 0x41d   : >> { %s2092_s9 = spop %2091 }
 0x41e   : >> { %p1157_p11 = scmp.lt.f32.partialorder %s2092_s9, %s2882_s6  ;;  %s2094_s10 = spop %2093 }
 0x41f   : >> { %s2096_s11 = spop %2095 }
 0x420   : >> { %p3385_p12 = pneg %p1157_p11  ;;  %s1202_s13 = smax.f32 %s2096_s11, %s2094_s10 }
 0x421   : >> { %p3389_p13 = scmp.gt.f32.partialorder %s1202_s13, 100.0 }
 0x423   : >> { %p1205_p0 = pnand %p3385_p12, %p3389_p13 }
 0x425   : >> { %s2060_s20 = scalar_select %p1205_p0, 0, 1 }
 0x427   : >> { %v1232_v50 = vstv %s2060_s20 }
 0x428   : >> { %vm3411_vm4 = vcmp.eq.s32.totalorder %v1232_v50, 1 }
 0x429   : >> { %v3418_v18 = vsel %vm3411_vm4, %v1223_v0, %v2581_v18   ;;  %v3423_v15 = vsel %vm3411_vm4, %v1224_v59, %v2577_v15   ;;  %v3428_v17 = vsel %vm3411_vm4, %v1225_v57, %v2573_v17   ;;  %v3433_v14 = vsel %vm3411_vm4, %v1226_v9, %v2569_v14  }
 0x42a   : >> { %v3932_v21 = vmov %v3418_v18  ;;  %v3933_v53 = vmov %v3423_v15  ;;  %v3934_v7 = vmov %v3428_v17  ;;  %v3935_v27 = vmov %v3433_v14 }
 0x42b   : >> { %v3438_v34 = vsel %vm3411_vm4, %v1227_v40, %v2565_v34   ;;  %v3443_v19 = vsel %vm3411_vm4, %v1228_v28, %v2561_v19   ;;  %v3448_v13 = vsel %vm3411_vm4, %v1229_v41, %v2557_v13   ;;  %v3453_v11 = vsel %vm3411_vm4, %v1230_v47, %v2553_v11   ;;  %1257 = sbr.rel (%p1205_p0) target bundleno = 1220 (0x4c4), region = 47 }
 0x42c   : >> { %v3936_v52 = vmov %v3438_v34  ;;  %v3937_v38 = vmov %v3443_v19  ;;  %v3938_v61 = vmov %v3448_v13  ;;  %v3939_v37 = vmov %v3453_v11 }
 0x42d   : >> { %v3458_v6 = vsel %vm3411_vm4, %v1244_v24, %v2549_v6   ;;  %v1246_v32 = vsel %vm3411_vm4, 1.0, %v3283_v22  ;;  %v1247_v35 = vsel %vm3411_vm4, 1.0, %v3255_v5  ;;  %v1248_v12 = vsel %vm3411_vm4, 1.0, %v3258_v2 }
 0x42e   : >> { %v3940_v29 = vmov %v3458_v6  ;;  %v1249_v25 = vsel %vm3411_vm4, 1.0, %v3927_v20  ;;  %v1250_v36 = vsel %vm3411_vm4, 1.0, %v3313_v23  ;;  %v1251_v55 = vsel %vm3411_vm4, 1.0, %v3308_v58 }
 0x42f   : >> { %v1252_v1 = vsel %vm3411_vm4, 1.0, %v3328_v45  ;;  %v1253_v30 = vsel %vm3411_vm4, 1.0, %v3325_v62  ;;  %v1254_v3 = vsel %vm3411_vm4, 1.0, %v3104_v33  ;;  %v1255_v6 = vsel %vm3411_vm4, %v3370_v63, %v3366_v10  }
 0x430   : >> { %v2591_v11 = vmov 0   ;;  %v1262_v13 = vld [vmem:[#allocation2 + $0x20] sm:$0xff]  ;;  %v1315_v34 = vperm.slane %v3940_v29, 0  ;;  %v1263_v18 = vld [vmem:[#allocation2 + $0x28] sm:$0xff]  ;;  %v1260_v51 = vld [vmem:[#allocation2 + $0x10] sm:$0xff] }
 0x431   : >> { %2330 = vset.pattern.permute.xlu1 %v2591_v11  ;;  %2329 = vset.pattern.permute.xlu0 %v2591_v11  ;;  %v1258_v24 = vld [vmem:[#allocation2] sm:$0xff] }
 0x432   : >> { %1278 = vperm.xlu1 %2330, %v3934_v7   ;;  %1268 = vperm.xlu0 %2329, %v3932_v21  }
 0x433   : >> { %2331 = vset.pattern.permute.xlu2 %v2591_v11  ;;  %v1261_v11 = vld [vmem:[#allocation2 + $0x18] sm:$0xff] }
 0x434   : >> { %1288 = vperm.xlu2 %2331, %v3936_v52  }
 0x43a   : >> { %1283 = vperm.xlu1 %2330, %v3935_v27   ;;  %1273 = vperm.xlu0 %2329, %v3933_v53  }
 0x43c   : >> { %1293 = vperm.xlu2 %2331, %v3937_v38  }
 0x442   : >> { %1303 = vperm.xlu1 %2330, %v3939_v37   ;;  %1298 = vperm.xlu0 %2329, %v3938_v61  }
 0x48e   : >> { %v1289_v19 = vpop.permute.xlu2 %1288 }
 0x48f   : >> { %v1310_v14 = vsub.f32 %v1262_v13, %v1289_v19  ;;  %v1259_v13 = vld [vmem:[#allocation2 + $0x8] sm:$0xff] }
 0x491   : >> { %v1321_v17 = vsub.f32 %v1310_v14, %v1315_v34 }
 0x493   : >> { %v1333_v15 = vmul.f32 1.442695, %v1321_v17 }
 0x495   : >> { %2332 = vpow2.f32 %v1333_v15 }
 0x496   : >> { %v1294_v4 = vpop.permute.xlu2 %1293 }
 0x497   : >> { %v1311_v26 = vsub.f32 %v1263_v18, %v1294_v4 }
 0x499   : >> { %v1322_v44 = vsub.f32 %v1311_v26, %v1315_v34 }
 0x49b   : >> { %v2333_v31 = vpop.eup %2332  ;;  %v1335_v60 = vmul.f32 1.442695, %v1322_v44 }
 0x49c   : >> { %1345 = vst.msk [vmem:[#allocation3 + $0x20] sm:$0xff] %vm562_vm2, %v2333_v31 }
 0x49d   : >> { %2334 = vpow2.f32 %v1335_v60 }
 0x4a3   : >> { %v2335_v59 = vpop.eup %2334 }
 0x4a4   : >> { %v1279_v57 = vpop.permute.xlu1 %1278  ;;  %v1269_v0 = vpop.permute.xlu0 %1268  ;;  %1346 = vst.msk [vmem:[#allocation3 + $0x28] sm:$0xff] %vm562_vm2, %v2335_v59 }
 0x4a5   : >> { %v1308_v28 = vsub.f32 %v1260_v51, %v1279_v57  ;;  %v1306_v9 = vsub.f32 %v1258_v24, %v1269_v0  ;;  %v1265_v51 = vld [vmem:[#allocation2 + $0x38] sm:$0xff]  ;;  %v1264_v24 = vld [vmem:[#allocation2 + $0x30] sm:$0xff] }
 0x4a7   : >> { %v1319_v50 = vsub.f32 %v1308_v28, %v1315_v34  ;;  %v1317_v40 = vsub.f32 %v1306_v9, %v1315_v34 }
 0x4a9   : >> { %v1329_v41 = vmul.f32 1.442695, %v1319_v50  ;;  %v1325_v47 = vmul.f32 1.442695, %v1317_v40 }
 0x4ab   : >> { %2336 = vpow2.f32 %v1329_v41 }
 0x4ac   : >> { %2338 = vpow2.f32 %v1325_v47  ;;  %v1284_v19 = vpop.permute.xlu1 %1283  ;;  %v1274_v14 = vpop.permute.xlu0 %1273 }
 0x4ad   : >> { %v1309_v17 = vsub.f32 %v1261_v11, %v1284_v19  ;;  %v1307_v15 = vsub.f32 %v1259_v13, %v1274_v14 }
 0x4af   : >> { %v1320_v18 = vsub.f32 %v1309_v17, %v1315_v34  ;;  %v1318_v4 = vsub.f32 %v1307_v15, %v1315_v34 }
 0x4b1   : >> { %v2337_v26 = vpop.eup %2336  ;;  %v1331_v44 = vmul.f32 1.442695, %v1320_v18  ;;  %v1327_v31 = vmul.f32 1.442695, %v1318_v4 }
 0x4b2   : >> { %v2339_v60 = vpop.eup %2338  ;;  %1343 = vst.msk [vmem:[#allocation3 + $0x10] sm:$0xff] %vm562_vm2, %v2337_v26 }
 0x4b3   : >> { %1341 = vst.msk [vmem:[#allocation3] sm:$0xff] %vm562_vm2, %v2339_v60  ;;  %2340 = vpow2.f32 %v1331_v44 }
 0x4b4   : >> { %2342 = vpow2.f32 %v1327_v31  ;;  %v1304_v59 = vpop.permute.xlu1 %1303  ;;  %v1299_v57 = vpop.permute.xlu0 %1298 }
 0x4b5   : >> { %v1313_v0 = vsub.f32 %v1265_v51, %v1304_v59  ;;  %v1312_v28 = vsub.f32 %v1264_v24, %v1299_v57 }
 0x4b7   : >> { %v1324_v9 = vsub.f32 %v1313_v0, %v1315_v34  ;;  %v1323_v50 = vsub.f32 %v1312_v28, %v1315_v34 }
 0x4b9   : >> { %v2341_v40 = vpop.eup %2340  ;;  %v1339_v41 = vmul.f32 1.442695, %v1324_v9  ;;  %v1337_v47 = vmul.f32 1.442695, %v1323_v50 }
 0x4ba   : >> { %v2343_v11 = vpop.eup %2342  ;;  %1344 = vst.msk [vmem:[#allocation3 + $0x18] sm:$0xff] %vm562_vm2, %v2341_v40 }
 0x4bb   : >> { %1342 = vst.msk [vmem:[#allocation3 + $0x8] sm:$0xff] %vm562_vm2, %v2343_v11  ;;  %2344 = vpow2.f32 %v1339_v41 }
 0x4bc   : >> { %2346 = vpow2.f32 %v1337_v47 }
 0x4c1   : >> { %v2345_v13 = vpop.eup %2344 }
 0x4c2   : >> { %v2347_v19 = vpop.eup %2346  ;;  %1348 = vst.msk [vmem:[#allocation3 + $0x38] sm:$0xff] %vm562_vm2, %v2345_v13 }
 0x4c3   : >> { %1347 = vst.msk [vmem:[#allocation3 + $0x30] sm:$0xff] %vm562_vm2, %v2347_v19 }
 0x4c4 PF: >> { %s1349_s8 = sadd.s32 2, %s2585_s8   ;;  %v3942_v10 = vmov %v1255_v6  ;;  %v3943_v6 = vmov %v3940_v29  ;;  %v3944_v11 = vmov %v3939_v37  ;;  %v3945_v13 = vmov %v3938_v61 }
 0x4c5   : >> { %p3514_p1 = scmp.lt.s32.totalorder %s1349_s8, 50  ;;  %v3946_v19 = vmov %v3937_v38  ;;  %v3947_v34 = vmov %v3936_v52  ;;  %v3948_v14 = vmov %v3935_v27  ;;  %v3949_v17 = vmov %v3934_v7 }
 0x4c6   : >> { %v3950_v15 = vmov %v3933_v53  ;;  %v3951_v18 = vmov %v3932_v21 }
 0x4c7   : >> { %p654_p2 = pnand %p3385_p12, %p3514_p1 }
 0x4c8   : > { %v3952_v63 = vmov (%p654_p2), 0   ;;  %v3953_v18 = vld [vmem:[#allocation11_spill] sm:$0xff] (%p654_p2)  ;;  %v3955_v31 = vld [vmem:[#allocation12_spill] sm:$0xff] (%p654_p2)  ;;  %2351 = vlog2.f32 (%p654_p2), %v1246_v32  ;;  %v3956_v10 = vld [vmem:[#allocation9_spill] sm:$0xff] (%p654_p2)  ;;  %s2071_s29 = sshll.u32 (%p654_p2), %s2638_s19, 3  ;;  %s1861_s10 = sshll.u32 (%p654_p2), %s231_s7, 4  ;;  %s1862_s10 = int_to_ptr.vmem [resolvable:$true] %s1861_s10 }
 0x4c9   : > { %657 = sbr.rel (!%p654_p2) target bundleno = 241 (0xf1), region = 91  ;;  %2349 = vset.pattern.permute.xlu1 (%p654_p2), %v3952_v63  ;;  %2348 = vset.pattern.permute.xlu0 (%p654_p2), %v3952_v63  ;;  %v1396_v4 = vsub.f32 (%p654_p2), 7.351508, %v3953_v18  ;;  %v3954_v26 = vld [vmem:[#allocation7_spill] sm:$0xff] (%p654_p2)  ;;  %v1398_v60 = vsub.f32 (%p654_p2), 7.351508, %v3955_v31  ;;  %2353 = vlog2.f32 (%p654_p2), %v1248_v12  ;;  %s1859_s8 = scalar_lea.hbm (%p654_p2), %s3874_s4, %s2071_s29 }
 0x4ca   : > { %v1394_v44 = vsub.f32 (%p654_p2), 7.351508, %v3954_v26  ;;  %2350 = vset.pattern.permute.xlu2 (%p654_p2), %v3952_v63  ;;  %2355 = vlog2.f32 (%p654_p2), %v1247_v35  ;;  %v1397_v6 = vsub.f32 (%p654_p2), 7.351508, %v3956_v10  ;;  %v3957_v34 = vld [vmem:[#allocation8_spill] sm:$0xff] (%p654_p2)  ;;  %v3958_v22 = vld [vmem:[#allocation14_spill] sm:$0xff] (%p654_p2) }
 0x4cb   : > { %1414 = vperm.xlu1 (%p654_p2), %2349, %v1396_v4   ;;  %1424 = vperm.xlu2 (%p654_p2), %2350, %v1398_v60   ;;  %v1395_v14 = vsub.f32 (%p654_p2), 7.351508, %v3957_v34  ;;  %2357 = vlog2.f32 (%p654_p2), %v1249_v25  ;;  %v1399_v32 = vsub.f32 (%p654_p2), 7.351508, %v3958_v22  ;;  %v3959_v51 = vld [vmem:[#allocation10_spill] sm:$0xff] (%p654_p2)  ;;  %v3960_v20 = vld [vmem:[#allocation13_spill] sm:$0xff] (%p654_p2) }
 0x4cc   : > { %1404 = vperm.xlu0 (%p654_p2), %2348, %v1394_v44   ;;  %2359 = vlog2.f32 (%p654_p2), %v1251_v55  ;;  %v1401_v24 = vsub.f32 (%p654_p2), 7.351508, %v3959_v51  ;;  %v1400_v25 = vsub.f32 (%p654_p2), 7.351508, %v3960_v20  ;;  %v3614_v44 = vld [vmem:[#allocation2 + $0x20] sm:$0xff] (%p654_p2)  ;;  %v3961_v34 = vld [vmem:[#allocation15_spill] sm:$0xff] (%p654_p2) }
 0x4cd   : > { %2361 = vlog2.f32 (%p654_p2), %v1250_v36  ;;  %v3633_v51 = vld [vmem:[#allocation2 + $0x18] sm:$0xff] (%p654_p2)  ;;  %s1863_s12 = sshll.u32 (%p654_p2), %s1859_s8, 4  ;;  %s1849_s19 = scalar_lea.sflag (%p654_p2), [#allocation5], %s229_s27  ;;  %s1864_s12 = int_to_ptr.hbm [resolvable:$true] %s1863_s12 }
 0x4ce   : > { %v2352_v17 = vpop.eup %2351  ;;  %2363 = vlog2.f32 %v1252_v1  ;;  %s2449_s20 = sshra.s32 %s1864_s12, 4  ;;  %s2450_s20 = int_to_ptr.hbm [resolvable:$true] %s2449_s20 }
 0x4cf   : > { %v1359_v15 = vmul.f32 0.6931472, %v2352_v17  ;;  %v2354_v2 = vpop.eup %2353  ;;  %2365 = vlog2.f32 %v1253_v30  ;;  %s2451_s22 = scalar_lea.hbm %s2450_s20, 8  ;;  %p2456_p8 = scmp.lt.s32.totalorder %s2450_s20, %s3874_s4 }
 0x4d0   : > { %v2356_v12 = vpop.eup %2355  ;;  %v1363_v59 = vmul.f32 0.6931472, %v2354_v2  ;;  %2367 = vlog2.f32 %v1254_v3  ;;  %p2452_p3 = scmp.ne.s32.totalorder %s2450_s20, %s2451_s22 }
 0x4d1   : > { %v1374_v5 = vmul.f32 -1.0, %v1359_v15  ;;  %v2358_v35 = vpop.eup %2357  ;;  %v1361_v57 = vmul.f32 0.6931472, %v2356_v12 }
 0x4d2   : > { %v1365_v58 = vmul.f32 0.6931472, %v2358_v35  ;;  %v2360_v55 = vpop.eup %2359  ;;  %v1376_v28 = vmul.f32 -1.0, %v1363_v59  ;;  %p2453_p4 = pnand %p2452_p3, %p2655_p5 }
 0x4d3   : > { %1419 = vperm.xlu1 %2349, %v1397_v6   ;;  %1429 = vperm.xlu2 %2350, %v1399_v32   ;;  %v1382_v0 = vadd.f32 %v1374_v5, %v3932_v21  ;;  %v1375_v9 = vmul.f32 -1.0, %v1361_v57  ;;  %v2362_v50 = vpop.eup %2361  ;;  %v1369_v21 = vmul.f32 0.6931472, %v2360_v55  ;;  %v3622_v6 = vld [vmem:[#allocation2 + $0x10] sm:$0xff] }
 0x4d4   : > { %1409 = vperm.xlu0 %2348, %v1395_v14   ;;  %v1377_v23 = vmul.f32 -1.0, %v1365_v58  ;;  %v2364_v36 = vpop.eup %2363  ;;  %v1384_v45 = vadd.f32 %v1376_v28, %v3934_v7  ;;  %v1367_v40 = vmul.f32 0.6931472, %v2362_v50  ;;  %v1581_v14 = vsub.f32 7.351508, %v3961_v34  ;;  %p2454_p7 = pneg %p2453_p4 }
 0x4d5   : > { %v1383_v1 = vadd.f32 %v1375_v9, %v3933_v53  ;;  %v1371_v47 = vmul.f32 0.6931472, %v2364_v36  ;;  %v1379_v11 = vmul.f32 -1.0, %v1369_v21  ;;  %v2366_v19 = vpop.eup %2365 }
 0x4d6   : > { %v1385_v41 = vadd.f32 %v1377_v23, %v3935_v27  ;;  %v1378_v13 = vmul.f32 -1.0, %v1367_v40  ;;  %v1373_v30 = vmul.f32 0.6931472, %v2366_v19  ;;  %v2368_v4 = vpop.eup %2367  ;;  %v3629_v5 = vperm.slane %v1581_v14, 0 }
 0x4d7   : > { %v1380_v63 = vmul.f32 -1.0, %v1371_v47  ;;  %v1387_v18 = vadd.f32 %v1379_v11, %v3937_v38  ;;  %v1391_v26 = vmul.f32 0.6931472, %v2368_v4 }
 0x4d8   : > { %v1386_v62 = vadd.f32 %v1378_v13, %v3936_v52  ;;  %v1381_v53 = vmul.f32 -1.0, %v1373_v30  ;;  %v1588_v47 = vadd.f32 %v3629_v5, %v3633_v51 }
 0x4d9   : > { %v1388_v7 = vadd.f32 %v1380_v63, %v3938_v61  ;;  %v1392_v38 = vmul.f32 -1.0, %v1391_v26 }
 0x4da   : > { %v1389_v27 = vadd.f32 %v1381_v53, %v3939_v37  ;;  %v3618_v37 = vld [vmem:[#allocation2 + $0x28] sm:$0xff] }
 0x4db   : > { %1439 = vperm.xlu1 %2349, %v1401_v24   ;;  %1595 = vperm.xlu2 %2350, %v1382_v0   ;;  %v1393_v52 = vadd.f32 %v1392_v38, %v3940_v29  ;;  %v3624_v29 = vld [vmem:[#allocation2] sm:$0xff]  ;;  %v3635_v24 = vld [vmem:[#allocation2 + $0x8] sm:$0xff]  ;;  %v1590_v14 = vadd.f32 %v3629_v5, %v3618_v37 }
 0x4dc   : > { %1434 = vperm.xlu0 %2348, %v1400_v25   ;;  %v1585_v20 = vadd.f32 %v3629_v5, %v3624_v29  ;;  %v1586_v4 = vadd.f32 %v3629_v5, %v3635_v24 }
 0x4dd   : > { %v1451_v60 = vperm.slane %v1393_v52, 0 }
 0x4e3   : > { %1605 = vperm.xlu1 %2349, %v1384_v45   ;;  %1610 = vperm.xlu2 %2350, %v1385_v41   ;;  %v3651_v45 = vld [vmem:[#allocation2 + $0x38] sm:$0xff]  ;;  %v3654_v41 = vld [vmem:[#allocation2 + $0x30] sm:$0xff] }
 0x4e4   : > { %1600 = vperm.xlu0 %2348, %v1383_v1   ;;  %v1591_v38 = vadd.f32 %v3629_v5, %v3654_v41 }
 0x4eb   : > { %1620 = vperm.xlu1 %2349, %v1387_v18   ;;  %1625 = vperm.xlu2 %2350, %v1388_v7  }
 0x4ec   : > { %1615 = vperm.xlu0 %2348, %v1386_v62  }
 0x4f4   : > { %1630 = vperm.xlu0 %2348, %v1389_v27   ;;  %v1587_v27 = vadd.f32 %v3629_v5, %v3622_v6 }
 0x525   : > { %v1425_v61 = vpop.permute.xlu2 %1424 }
 0x526   : > { %v1446_v31 = vadd.f32 %v1425_v61, %v3614_v44 }
 0x528   : > { %v1457_v10 = vsub.f32 %v1446_v31, %v1451_v60 }
 0x52a   : > { %1465 = vst.msk [vmem:[#allocation3 + $0x20] sm:$0xff] %vm562_vm2, %v1457_v10 }
 0x52d   : > { %v1430_v16 = vpop.permute.xlu2 %1429 }
 0x52e   : > { %v1447_v33 = vadd.f32 %v1430_v16, %v3618_v37 }
 0x530   : > { %v1458_v3 = vsub.f32 %v1447_v33, %v1451_v60 }
 0x531   : > { %v3660_v19 = vld [vmem:[#allocation3 + $0x20] sm:$0xff] }
 0x532   : > { %1466 = vst.msk [vmem:[#allocation3 + $0x28] sm:$0xff] %vm562_vm2, %v1458_v3  ;;  %v1489_v62 = vsel %vm562_vm2, %v3660_v19, -inf }
 0x535   : > { %v1596_v35 = vpop.permute.xlu2 %1595 }
 0x536   : > { %v1633_v58 = vsub.f32 %v1585_v20, %v1596_v35 }
 0x539   : > { %v3697_v20 = vld [vmem:[#allocation3 + $0x28] sm:$0xff] }
 0x53d   : > { %v1415_v22 = vpop.permute.xlu1 %1414  ;;  %v1611_v1 = vpop.permute.xlu2 %1610 }
 0x53e   : > { %v1405_v32 = vpop.permute.xlu0 %1404  ;;  %v1444_v17 = vadd.f32 %v1415_v22, %v3622_v6  ;;  %v1636_v7 = vsub.f32 %v1588_v47, %v1611_v1  ;;  %v1589_v22 = vadd.f32 %v3629_v5, %v3614_v44 }
 0x53f   : > { %v1442_v15 = vadd.f32 %v1405_v32, %v3624_v29 }
 0x540   : > { %v1455_v2 = vsub.f32 %v1444_v17, %v1451_v60 }
 0x541   : > { %v1453_v12 = vsub.f32 %v1442_v15, %v1451_v60 }
 0x542   : > { %1463 = vst.msk [vmem:[#allocation3 + $0x10] sm:$0xff] %vm562_vm2, %v1455_v2 }
 0x543   : > { %1461 = vst.msk [vmem:[#allocation3] sm:$0xff] %vm562_vm2, %v1453_v12 }
 0x545   : > { %v1420_v25 = vpop.permute.xlu1 %1419  ;;  %v1626_v31 = vpop.permute.xlu2 %1625 }
 0x546   : > { %v1410_v59 = vpop.permute.xlu0 %1409  ;;  %v1445_v57 = vadd.f32 %v1420_v25, %v3633_v51  ;;  %v1639_v16 = vsub.f32 %v1591_v38, %v1626_v31  ;;  %v1592_v25 = vadd.f32 %v3629_v5, %v3651_v45 }
 0x547   : > { %v1443_v0 = vadd.f32 %v1410_v59, %v3635_v24  ;;  %v1492_v59 = vsel %vm562_vm2, %v3697_v20, -inf }
 0x548   : > { %v1456_v55 = vsub.f32 %v1445_v57, %v1451_v60 }
 0x549   : > { %v1454_v28 = vsub.f32 %v1443_v0, %v1451_v60  ;;  %v3641_v9 = vld [vmem:[#allocation3 + $0x10] sm:$0xff] }
 0x54a   : > { %1464 = vst.msk [vmem:[#allocation3 + $0x18] sm:$0xff] %vm562_vm2, %v1456_v55  ;;  %v1483_v50 = vsel %vm562_vm2, %v3641_v9, -inf  ;;  %v3646_v23 = vld [vmem:[#allocation3] sm:$0xff] }
 0x54b   : > { %1462 = vst.msk [vmem:[#allocation3 + $0x8] sm:$0xff] %vm562_vm2, %v1454_v28  ;;  %1484 = vmax.xlane.f32.xlu0 %v1483_v50  ;;  %v1477_v36 = vsel %vm562_vm2, %v3646_v23, -inf }
 0x54c   : > { %1641 = vst.msk [vmem:[#allocation3] sm:$0xff] %vm562_vm2, %v1633_v58  ;;  %1478 = vmax.xlane.f32.xlu1 %v1477_v36 }
 0x54d   : > { %v1440_v21 = vpop.permute.xlu1 %1439 }
 0x54e   : > { %v1435_v40 = vpop.permute.xlu0 %1434  ;;  %v1449_v11 = vadd.f32 %v1440_v21, %v3651_v45 }
 0x54f   : > { %v1448_v13 = vadd.f32 %v1435_v40, %v3654_v41 }
 0x550   : > { %v1460_v63 = vsub.f32 %v1449_v11, %v1451_v60 }
 0x551   : > { %v1459_v18 = vsub.f32 %v1448_v13, %v1451_v60  ;;  %v3664_v30 = vld [vmem:[#allocation3 + $0x18] sm:$0xff] }
 0x552   : > { %1468 = vst.msk [vmem:[#allocation3 + $0x38] sm:$0xff] %vm562_vm2, %v1460_v63  ;;  %v3667_v53 = vld [vmem:[#allocation3 + $0x8] sm:$0xff]  ;;  %v1486_v17 = vsel %vm562_vm2, %v3664_v30, -inf }
 0x553   : > { %1467 = vst.msk [vmem:[#allocation3 + $0x30] sm:$0xff] %vm562_vm2, %v1459_v18  ;;  %v1480_v26 = vsel %vm562_vm2, %v3667_v53, -inf  ;;  %v1649_v28 = vld [vmem:[#allocation3] sm:$0xff] }
 0x554   : > { %1481 = vmax.xlane.f32.xlu2 %v1480_v26  ;;  %1490 = vmax.xlane.f32.xlu1 %v1489_v62  ;;  %1644 = vst.msk [vmem:[#allocation3 + $0x18] sm:$0xff] %vm562_vm2, %v1636_v7  ;;  %v1657_v5 = vsel %vm562_vm2, %v1649_v28, -inf }
 0x555   : > { %v1606_v52 = vpop.permute.xlu1 %1605 }
 0x556   : > { %v1601_v61 = vpop.permute.xlu0 %1600  ;;  %v1635_v60 = vsub.f32 %v1587_v27, %v1606_v52 }
 0x557   : > { %v1634_v10 = vsub.f32 %v1586_v4, %v1601_v61 }
 0x558   : > { %1643 = vst.msk [vmem:[#allocation3 + $0x10] sm:$0xff] %vm562_vm2, %v1635_v60 }
 0x559   : > { %1642 = vst.msk [vmem:[#allocation3 + $0x8] sm:$0xff] %vm562_vm2, %v1634_v10  ;;  %v3681_v33 = vld [vmem:[#allocation3 + $0x38] sm:$0xff] }
 0x55a   : > { %v3683_v3 = vld [vmem:[#allocation3 + $0x30] sm:$0xff]  ;;  %v1498_v34 = vsel %vm562_vm2, %v3681_v33, -inf }
 0x55b   : > { %v1495_v32 = vsel %vm562_vm2, %v3683_v3, -inf  ;;  %1647 = vst.msk [vmem:[#allocation3 + $0x30] sm:$0xff] %vm562_vm2, %v1639_v16  ;;  %v1652_v47 = vld [vmem:[#allocation3 + $0x18] sm:$0xff] }
 0x55c   : > { %1496 = vmax.xlane.f32.xlu0 %v1495_v32  ;;  %1487 = vmax.xlane.f32.xlu2 %v1486_v17  ;;  %v1660_v27 = vsel %vm562_vm2, %v1652_v47, -inf }
 0x55d   : > { %1499 = vmax.xlane.f32.xlu1 %v1498_v34  ;;  %v1621_v15 = vpop.permute.xlu1 %1620 }
 0x55e   : > { %v1616_v2 = vpop.permute.xlu0 %1615  ;;  %v1638_v12 = vsub.f32 %v1590_v14, %v1621_v15 }
 0x55f   : > { %v1637_v35 = vsub.f32 %v1589_v22, %v1616_v2  ;;  %v1651_v40 = vld [vmem:[#allocation3 + $0x10] sm:$0xff] }
 0x560   : > { %1646 = vst.msk [vmem:[#allocation3 + $0x28] sm:$0xff] %vm562_vm2, %v1638_v12  ;;  %v1650_v50 = vld [vmem:[#allocation3 + $0x8] sm:$0xff]  ;;  %v1659_v7 = vsel %vm562_vm2, %v1651_v40, -inf }
 0x561   : > { %1645 = vst.msk [vmem:[#allocation3 + $0x20] sm:$0xff] %vm562_vm2, %v1637_v35  ;;  %v1658_v11 = vsel %vm562_vm2, %v1650_v50, -inf }
 0x562   : > { %v1655_v36 = vld [vmem:[#allocation3 + $0x30] sm:$0xff] }
 0x563   : > { %v1665_v13 = vsel %vm562_vm2, %v1655_v36, -inf }
 0x564   : > { %1493 = vmax.xlane.f32.xlu2 %v1492_v59  ;;  %v1666_v26 = vmax.f32 %v1659_v7, %v1665_v13 }
 0x566   : > { %v1631_v57 = vpop.permute.xlu0 %1630 }
 0x567   : > { %v1640_v0 = vsub.f32 %v1592_v25, %v1631_v57  ;;  %v1654_v55 = vld [vmem:[#allocation3 + $0x28] sm:$0xff] }
 0x568   : > { %v1653_v58 = vld [vmem:[#allocation3 + $0x20] sm:$0xff]  ;;  %v1663_v21 = vsel %vm562_vm2, %v1654_v55, -inf }
 0x569   : > { %1648 = vst.msk [vmem:[#allocation3 + $0x38] sm:$0xff] %vm562_vm2, %v1640_v0  ;;  %v1661_v1 = vsel %vm562_vm2, %v1653_v58, -inf  ;;  %v1664_v18 = vmax.f32 %v1658_v11, %v1663_v21 }
 0x56a   : > { %v1662_v63 = vmax.f32 %v1657_v5, %v1661_v1 }
 0x56c   : > { %v1669_v52 = vmax.f32 %v1662_v63, %v1664_v18 }
 0x570   : > { %v1656_v62 = vld [vmem:[#allocation3 + $0x38] sm:$0xff] }
 0x571   : > { %v1667_v4 = vsel %vm562_vm2, %v1656_v62, -inf }
 0x572   : > { %v1668_v38 = vmax.f32 %v1660_v27, %v1667_v4 }
 0x574   : > { %v1670_v61 = vmax.f32 %v1666_v26, %v1668_v38 }
 0x576   : > { %v1671_v31 = vmax.f32 %v1669_v52, %v1670_v61 }
 0x578   : > { %v1672_v60 = vrot.slane %v1671_v31, 4 }
 0x57a   : > { %v1673_v10 = vmax.f32 %v1671_v31, %v1672_v60 }
 0x57c   : > { %v1674_v16 = vrot.slane %v1673_v10, 2 }
 0x57e   : > { %v1675_v34 = vmax.f32 %v1673_v10, %v1674_v16 }
 0x580   : > { %v1676_v14 = vrot.slane %v1675_v34, 1 }
 0x582   : > { %v3713_v22 = vmax.f32 %v1675_v34, %v1676_v14 }
 0x584   : > { %v1678_v32 = vsub.f32 %v1649_v28, %v3713_v22  ;;  %v1679_v17 = vsub.f32 %v1650_v50, %v3713_v22  ;;  %v1680_v12 = vsub.f32 %v1651_v40, %v3713_v22  ;;  %v1681_v35 = vsub.f32 %v1652_v47, %v3713_v22 }
 0x585   : > { %v1682_v0 = vsub.f32 %v1653_v58, %v3713_v22  ;;  %v1683_v50 = vsub.f32 %v1654_v55, %v3713_v22  ;;  %v1684_v13 = vsub.f32 %v1655_v36, %v3713_v22  ;;  %v1685_v7 = vsub.f32 %v1656_v62, %v3713_v22 }
 0x586   : > { %v1686_v15 = vmul.f32 1.442695, %v1678_v32  ;;  %v1688_v2 = vmul.f32 1.442695, %v1679_v17  ;;  %v1690_v25 = vmul.f32 1.442695, %v1680_v12 }
 0x587   : > { %v1692_v1 = vmul.f32 1.442695, %v1681_v35  ;;  %v1694_v5 = vmul.f32 1.442695, %v1682_v0  ;;  %v1696_v47 = vmul.f32 1.442695, %v1683_v50 }
 0x588   : > { %2369 = vpow2.f32 %v1686_v15  ;;  %v1698_v27 = vmul.f32 1.442695, %v1684_v13  ;;  %v1700_v38 = vmul.f32 1.442695, %v1685_v7 }
 0x589   : > { %2371 = vpow2.f32 %v1688_v2 }
 0x58a   : > { %2373 = vpow2.f32 %v1690_v25 }
 0x58b   : > { %2375 = vpow2.f32 %v1692_v1 }
 0x58c   : > { %2377 = vpow2.f32 %v1694_v5 }
 0x58d   : > { %2379 = vpow2.f32 %v1696_v47 }
 0x58e   : > { %v2370_v59 = vpop.eup %2369  ;;  %2381 = vpow2.f32 %v1698_v27 }
 0x58f   : > { %v2372_v57 = vpop.eup %2371  ;;  %v1702_v21 = vsel %vm562_vm2, %v2370_v59, 0.0  ;;  %2383 = vpow2.f32 %v1700_v38 }
 0x590   : > { %v1703_v28 = vsel %vm562_vm2, %v2372_v57, 0.0  ;;  %v2374_v40 = vpop.eup %2373 }
 0x591   : > { %v1704_v11 = vadd.f32 %v1703_v28, %v1702_v21  ;;  %v1705_v63 = vsel %vm562_vm2, %v2374_v40, 0.0  ;;  %v2376_v18 = vpop.eup %2375 }
 0x592   : > { %v1707_v4 = vsel %vm562_vm2, %v2376_v18, 0.0  ;;  %v2378_v26 = vpop.eup %2377 }
 0x593   : > { %v1706_v58 = vadd.f32 %v1705_v63, %v1704_v11  ;;  %v1709_v52 = vsel %vm562_vm2, %v2378_v26, 0.0  ;;  %v2380_v61 = vpop.eup %2379 }
 0x594   : > { %v1711_v31 = vsel %vm562_vm2, %v2380_v61, 0.0  ;;  %v2382_v60 = vpop.eup %2381 }
 0x595   : > { %v1708_v55 = vadd.f32 %v1707_v4, %v1706_v58  ;;  %v1713_v16 = vsel %vm562_vm2, %v2382_v60, 0.0  ;;  %v2384_v62 = vpop.eup %2383 }
 0x596   : > { %v1715_v14 = vsel %vm562_vm2, %v2384_v62, 0.0 }
 0x597   : > { %v1710_v36 = vadd.f32 %v1709_v52, %v1708_v55 }
 0x599   : > { %v1712_v10 = vadd.f32 %v1711_v31, %v1710_v36 }
 0x59b   : > { %v1714_v34 = vadd.f32 %v1713_v16, %v1712_v10 }
 0x59d   : > { %v1716_v32 = vadd.f32 %v1715_v14, %v1714_v34 }
 0x59f   : > { %v1717_v17 = vrot.slane %v1716_v32, 4 }
 0x5a1   : > { %v1718_v15 = vadd.f32 %v1717_v17, %v1716_v32 }
 0x5a3   : > { %v1719_v59 = vrot.slane %v1718_v15, 2 }
 0x5a5   : > { %v1720_v1 = vadd.f32 %v1719_v59, %v1718_v15 }
 0x5be   : > { %v3731_v2 = vpop.xlane.xlu0 %1484 }
 0x5bf   : > { %v1503_v12 = vsub.f32 %v3641_v9, %v3731_v2  ;;  %v3735_v35 = vpop.xlane.xlu1 %1478  ;;  %v1721_v9 = vrot.slane %v1720_v1, 1 }
 0x5c0   : > { %v1501_v25 = vsub.f32 %v3646_v23, %v3735_v35 }
 0x5c1   : > { %v1513_v57 = vmul.f32 1.442695, %v1503_v12  ;;  %v1722_v63 = vadd.f32 %v1721_v9, %v1720_v1 }
 0x5c2   : > { %v1509_v0 = vmul.f32 1.442695, %v1501_v25 }
 0x5c3   : > { %2385 = vpow2.f32 %v1513_v57 }
 0x5c4   : > { %2387 = vpow2.f32 %v1509_v0 }
 0x5c7   : > { %v3739_v21 = vpop.xlane.xlu2 %1481  ;;  %v3741_v28 = vpop.xlane.xlu1 %1490 }
 0x5c8   : > { %v1502_v50 = vsub.f32 %v3667_v53, %v3739_v21  ;;  %v1505_v23 = vsub.f32 %v3660_v19, %v3741_v28 }
 0x5c9   : > { %v2386_v5 = vpop.eup %2385 }
 0x5ca   : > { %v2388_v40 = vpop.eup %2387  ;;  %v1511_v11 = vmul.f32 1.442695, %v1502_v50  ;;  %v1531_v13 = vsel %vm562_vm2, %v2386_v5, 0.0  ;;  %v1517_v18 = vmul.f32 1.442695, %v1505_v23 }
 0x5cb   : > { %1532 = vadd.xlane.f32.xlu1 %v1531_v13  ;;  %v1525_v47 = vsel %vm562_vm2, %v2388_v40, 0.0 }
 0x5cc   : > { %1526 = vadd.xlane.f32.xlu2 %v1525_v47  ;;  %2389 = vpow2.f32 %v1511_v11 }
 0x5cd   : > { %2391 = vlog2.f32 %v1722_v63 }
 0x5ce   : > { %2393 = vpow2.f32 %v1517_v18 }
 0x5cf   : > { %v3749_v58 = vpop.xlane.xlu0 %1496  ;;  %v3751_v7 = vpop.xlane.xlu2 %1487 }
 0x5d0   : > { %v1504_v53 = vsub.f32 %v3664_v30, %v3751_v7  ;;  %v3755_v27 = vpop.xlane.xlu1 %1499  ;;  %v1507_v4 = vsub.f32 %v3683_v3, %v3749_v58 }
 0x5d1   : > { %v1508_v55 = vsub.f32 %v3681_v33, %v3755_v27 }
 0x5d2   : > { %v2390_v19 = vpop.eup %2389  ;;  %v1515_v26 = vmul.f32 1.442695, %v1504_v53  ;;  %v1521_v52 = vmul.f32 1.442695, %v1507_v4 }
 0x5d3   : > { %v1528_v38 = vsel %vm562_vm2, %v2390_v19, 0.0  ;;  %v2392_v61 = vpop.eup %2391  ;;  %v1523_v36 = vmul.f32 1.442695, %v1508_v55 }
 0x5d4   : > { %1529 = vadd.xlane.f32.xlu0 %v1528_v38  ;;  %2395 = vpow2.f32 %v1515_v26  ;;  %v2394_v31 = vpop.eup %2393  ;;  %v1724_v62 = vmul.f32 0.6931472, %v2392_v61 }
 0x5d5   : > { %2397 = vpow2.f32 %v1521_v52  ;;  %v1537_v33 = vsel %vm562_vm2, %v2394_v31, 0.0 }
 0x5d6   : > { %2399 = vpow2.f32 %v1523_v36  ;;  %v1725_v34 = vadd.f32 %v1724_v62, %v3713_v22 }
 0x5d7   : > { %v3762_v30 = vpop.xlane.xlu2 %1493 }
 0x5d8   : > { %v1506_v60 = vsub.f32 %v3697_v20, %v3762_v30  ;;  %v3771_v12 = vadd.f32 -7.351508, %v1725_v34 }
 0x5da   : > { %v2396_v10 = vpop.eup %2395  ;;  %v1519_v3 = vmul.f32 1.442695, %v1506_v60  ;;  %v1760_v59 = vmul.f32 %v3771_v12, %v2709_v8 }
 0x5db   : > { %v1534_v16 = vsel %vm562_vm2, %v2396_v10, 0.0  ;;  %v2398_v14 = vpop.eup %2397 }
 0x5dc   : > { %1535 = vadd.xlane.f32.xlu2 %v1534_v16  ;;  %1538 = vadd.xlane.f32.xlu0 %v1537_v33  ;;  %2401 = vpow2.f32 %v1519_v3  ;;  %v2400_v32 = vpop.eup %2399  ;;  %v1543_v20 = vsel %vm562_vm2, %v2398_v14, 0.0  ;;  %v1761_v57 = vsel %vm596_vm1, %v1760_v59, 0.0 }
 0x5dd   : > { %v1546_v25 = vsel %vm562_vm2, %v2400_v32, 0.0 }
 0x5e2   : > { %v2402_v17 = vpop.eup %2401 }
 0x5e3   : > { %v1540_v15 = vsel %vm562_vm2, %v2402_v17, 0.0 }
 0x5e4   : > { %1541 = vadd.xlane.f32.xlu1 %v1540_v15  ;;  %1544 = vadd.xlane.f32.xlu2 %v1543_v20 }
 0x5e5   : > { %1547 = vadd.xlane.f32.xlu0 %v1546_v25 }
 0x5ec   : > { %1762 = vadd.xlane.f32.xlu2 %v1761_v57 }
 0x63e   : > { %v1533_v22 = vpop.xlane.xlu1 %1532 }
 0x63f   : > { %v1527_v0 = vpop.xlane.xlu2 %1526  ;;  %2403 = vlog2.f32 %v1533_v22 }
 0x640   : > { %2405 = vlog2.f32 %v1527_v0 }
 0x645   : > { %v2404_v1 = vpop.eup %2403 }
 0x646   : > { %v2406_v50 = vpop.eup %2405  ;;  %v1554_v5 = vmul.f32 0.6931472, %v2404_v1 }
 0x647   : > { %v1550_v9 = vmul.f32 0.6931472, %v2406_v50  ;;  %v1530_v40 = vpop.xlane.xlu0 %1529 }
 0x648   : > { %v1567_v11 = vadd.f32 %v1554_v5, %v3731_v2  ;;  %2407 = vlog2.f32 %v1530_v40 }
 0x649   : > { %v1565_v23 = vadd.f32 %v1550_v9, %v3735_v35 }
 0x64a   : > { %v2063_v13 = vadd.f32 -7.351508, %v1567_v11 }
 0x64b   : > { %v2061_v47 = vadd.f32 -7.351508, %v1565_v23 }
 0x64c   : > { %v1773_v8 = vsub.f32 %v3622_v6, %v2063_v13  ;;  %v1729_v15 = vmul.f32 %v2063_v13, %v2796_v48 }
 0x64d   : > { %v1771_v63 = vsub.f32 %v3624_v29, %v2061_v47  ;;  %v1727_v34 = vmul.f32 %v2061_v47, %v2764_v39 }
 0x64e   : > { %v2408_v18 = vpop.eup %2407  ;;  %v1781_v53 = vsub.f32 %v1773_v8, %v3771_v12  ;;  %v1739_v5 = vsel %vm1166_vm5, %v1729_v15, 0.0 }
 0x64f   : > { %v1779_v19 = vsub.f32 %v1771_v63, %v3771_v12  ;;  %v1552_v4 = vmul.f32 0.6931472, %v2408_v18  ;;  %v1536_v26 = vpop.xlane.xlu2 %1535  ;;  %v1539_v55 = vpop.xlane.xlu0 %1538  ;;  %v1736_v39 = vsel %vm1166_vm5, %v1727_v34, 0.0 }
 0x650   : > { %v1791_v38 = vmul.f32 1.442695, %v1781_v53  ;;  %2409 = vlog2.f32 %v1536_v26 }
 0x651   : > { %v1787_v2 = vmul.f32 1.442695, %v1779_v19  ;;  %v1566_v52 = vadd.f32 %v1552_v4, %v3739_v21  ;;  %2411 = vlog2.f32 %v1539_v55 }
 0x652   : > { %2413 = vpow2.f32 %v1791_v38 }
 0x653   : > { %2415 = vpow2.f32 %v1787_v2  ;;  %v2062_v35 = vadd.f32 -7.351508, %v1566_v52 }
 0x655   : > { %v1772_v6 = vsub.f32 %v3635_v24, %v2062_v35  ;;  %v1728_v36 = vmul.f32 %v2062_v35, %v2778_v42 }
 0x656   : > { %v2410_v29 = vpop.eup %2409 }
 0x657   : > { %v2412_v61 = vpop.eup %2411  ;;  %v1780_v31 = vsub.f32 %v1772_v6, %v3771_v12  ;;  %v1556_v60 = vmul.f32 0.6931472, %v2410_v29  ;;  %v1545_v10 = vpop.xlane.xlu2 %1544  ;;  %v1737_v32 = vsel %vm1166_vm5, %v1728_v36, 0.0 }
 0x658   : > { %v1542_v3 = vpop.xlane.xlu1 %1541  ;;  %v2414_v16 = vpop.eup %2413  ;;  %v1558_v33 = vmul.f32 0.6931472, %v2412_v61  ;;  %2417 = vlog2.f32 %v1545_v10  ;;  %v1738_v57 = vadd.f32 %v1737_v32, %v1736_v39 }
 0x659   : > { %v1548_v62 = vpop.xlane.xlu0 %1547  ;;  %v2416_v21 = vpop.eup %2415  ;;  %1805 = vst.msk [vmem:[#allocation3 + $0x10] sm:$0xff] %vm562_vm2, %v2414_v16  ;;  %v1789_v14 = vmul.f32 1.442695, %v1780_v31  ;;  %v1568_v24 = vadd.f32 %v1556_v60, %v3751_v7 }
 0x65a   : > { %2419 = vlog2.f32 %v1548_v62  ;;  %1803 = vst.msk [vmem:[#allocation3] sm:$0xff] %vm562_vm2, %v2416_v21  ;;  %v1569_v42 = vadd.f32 %v1558_v33, %v3741_v28 }
 0x65b   : > { %2421 = vlog2.f32 %v1542_v3  ;;  %v2064_v17 = vadd.f32 -7.351508, %v1568_v24 }
 0x65c   : > { %2423 = vpow2.f32 %v1789_v14  ;;  %v2065_v20 = vadd.f32 -7.351508, %v1569_v42 }
 0x65d   : > { %v1730_v25 = vmul.f32 %v2064_v17, %v2781_v43  ;;  %v1774_v59 = vsub.f32 %v3633_v51, %v2064_v17 }
 0x65e   : > { %v2418_v7 = vpop.eup %2417  ;;  %v1775_v22 = vsub.f32 %v3614_v44, %v2065_v20  ;;  %v1740_v44 = vadd.f32 %v1739_v5, %v1738_v57  ;;  %v1731_v13 = vmul.f32 %v2065_v20, %v2800_v49 }
 0x65f   : > { %v1782_v28 = vsub.f32 %v1774_v59, %v3771_v12  ;;  %v1562_v1 = vmul.f32 0.6931472, %v2418_v7  ;;  %v1741_v11 = vsel %vm1166_vm5, %v1730_v25, 0.0 }
 0x660   : > { %v2420_v0 = vpop.eup %2419  ;;  %v1783_v48 = vsub.f32 %v1775_v22, %v3771_v12  ;;  %v1742_v53 = vadd.f32 %v1741_v11, %v1740_v44  ;;  %v1813_v62 = vld [vmem:[#allocation3 + $0x10] sm:$0xff] }
 0x661   : > { %v2422_v50 = vpop.eup %2421  ;;  %v1564_v9 = vmul.f32 0.6931472, %v2420_v0  ;;  %v1793_v43 = vmul.f32 1.442695, %v1782_v28  ;;  %v1571_v51 = vadd.f32 %v1562_v1, %v3749_v58  ;;  %v1743_v58 = vsel %vm1166_vm5, %v1731_v13, 0.0 }
 0x662   : > { %v2424_v40 = vpop.eup %2423  ;;  %v1560_v23 = vmul.f32 0.6931472, %v2422_v50  ;;  %v1795_v47 = vmul.f32 1.442695, %v1783_v48  ;;  %v1744_v52 = vadd.f32 %v1743_v58, %v1742_v53  ;;  %v1822_v42 = vsel %vm562_vm2, %v1813_v62, 0.0  ;;  %v1763_v48 = vpop.xlane.xlu2 %1762 }
 0x663   : > { %1804 = vst.msk [vmem:[#allocation3 + $0x8] sm:$0xff] %vm562_vm2, %v2424_v40  ;;  %v1572_v8 = vadd.f32 %v1564_v9, %v3755_v27  ;;  %2425 = vpow2.f32 %v1793_v43  ;;  %v2067_v63 = vadd.f32 -7.351508, %v1571_v51  ;;  %v1764_v9 = vrot.slane %v1763_v48, 4 }
 0x664   : > { %v1570_v18 = vadd.f32 %v1560_v23, %v3762_v30  ;;  %2427 = vpow2.f32 %v1795_v47 }
 0x665   : > { %v2068_v19 = vadd.f32 -7.351508, %v1572_v8  ;;  %v1777_v4 = vsub.f32 %v3654_v41, %v2067_v63  ;;  %v1733_v2 = vmul.f32 %v2067_v63, %v2814_v54  ;;  %v1765_v40 = vadd.f32 %v1764_v9, %v1763_v48 }
 0x666   : > { %v2066_v26 = vadd.f32 -7.351508, %v1570_v18 }
 0x667   : > { %v1778_v55 = vsub.f32 %v3651_v45, %v2068_v19  ;;  %v1785_v38 = vsub.f32 %v1777_v4, %v3771_v12  ;;  %v1734_v29 = vmul.f32 %v2068_v19, %v2793_v46  ;;  %v1811_v46 = vld [vmem:[#allocation3] sm:$0xff]  ;;  %v1766_v11 = vrot.slane %v1765_v40, 2 }
 0x668   : > { %v1732_v49 = vmul.f32 %v2066_v26, %v2818_v56  ;;  %v1776_v27 = vsub.f32 %v3618_v37, %v2066_v26  ;;  %v1747_v37 = vsel %vm1166_vm5, %v1733_v2, 0.0  ;;  %v1819_v16 = vsel %vm562_vm2, %v1811_v46, 0.0 }
 0x669   : > { %v1786_v30 = vsub.f32 %v1778_v55, %v3771_v12  ;;  %v2426_v35 = vpop.eup %2425  ;;  %v1799_v6 = vmul.f32 1.442695, %v1785_v38  ;;  %v1767_v44 = vadd.f32 %v1766_v11, %v1765_v40 }
 0x66a   : > { %v1784_v41 = vsub.f32 %v1776_v27, %v3771_v12  ;;  %v1745_v61 = vsel %vm1166_vm5, %v1732_v49, 0.0  ;;  %v2428_v45 = vpop.eup %2427  ;;  %1806 = vst.msk [vmem:[#allocation3 + $0x18] sm:$0xff] %vm562_vm2, %v2426_v35  ;;  %v1812_v31 = vld [vmem:[#allocation3 + $0x8] sm:$0xff]  ;;  %v1749_v12 = vsel %vm1166_vm5, %v1734_v29, 0.0 }
 0x66b   : > { %v1801_v36 = vmul.f32 1.442695, %v1786_v30  ;;  %v1746_v56 = vadd.f32 %v1745_v61, %v1744_v52  ;;  %1807 = vst.msk [vmem:[#allocation3 + $0x20] sm:$0xff] %vm562_vm2, %v2428_v45  ;;  %2429 = vpow2.f32 %v1799_v6  ;;  %v1820_v3 = vsel %vm562_vm2, %v1812_v31, 0.0 }
 0x66c   : > { %v1797_v54 = vmul.f32 1.442695, %v1784_v41  ;;  %v1821_v34 = vadd.f32 %v1820_v3, %v1819_v16  ;;  %v1768_v8 = vrot.slane %v1767_v44, 1 }
 0x66d   : > { %2431 = vpow2.f32 %v1801_v36  ;;  %v1748_v60 = vadd.f32 %v1747_v37, %v1746_v56 }
 0x66e   : > { %2433 = vpow2.f32 %v1797_v54  ;;  %v1823_v17 = vadd.f32 %v1822_v42, %v1821_v34  ;;  %v1769_v53 = vadd.f32 %v1768_v8, %v1767_v44 }
 0x66f   : > { %v1750_v10 = vadd.f32 %v1749_v12, %v1748_v60 }
 0x671   : > { %1751 = vadd.xlane.f32.xlu1 %v1750_v10  ;;  %v2430_v33 = vpop.eup %2429  ;;  %v1814_v21 = vld [vmem:[#allocation3 + $0x18] sm:$0xff] }
 0x672   : > { %1809 = vst.msk [vmem:[#allocation3 + $0x30] sm:$0xff] %vm562_vm2, %v2430_v33  ;;  %v1824_v32 = vsel %vm562_vm2, %v1814_v21, 0.0  ;;  %v1815_v15 = vld [vmem:[#allocation3 + $0x20] sm:$0xff] }
 0x673   : > { %v2432_v14 = vpop.eup %2431  ;;  %v1825_v20 = vadd.f32 %v1824_v32, %v1823_v17  ;;  %v1826_v39 = vsel %vm562_vm2, %v1815_v15, 0.0 }
 0x674   : > { %v2434_v24 = vpop.eup %2433  ;;  %1810 = vst.msk [vmem:[#allocation3 + $0x38] sm:$0xff] %vm562_vm2, %v2432_v14 }
 0x675   : > { %1808 = vst.msk [vmem:[#allocation3 + $0x28] sm:$0xff] %vm562_vm2, %v2434_v24  ;;  %v1827_v7 = vadd.f32 %v1826_v39, %v1825_v20 }
 0x679   : > { %v1817_v59 = vld [vmem:[#allocation3 + $0x30] sm:$0xff] }
 0x67a   : > { %v1830_v28 = vsel %vm562_vm2, %v1817_v59, 0.0 }
 0x67b   : > { %v1818_v22 = vld [vmem:[#allocation3 + $0x38] sm:$0xff] }
 0x67c   : > { %v1816_v25 = vld [vmem:[#allocation3 + $0x28] sm:$0xff]  ;;  %v1832_v50 = vsel %vm562_vm2, %v1818_v22, 0.0 }
 0x67d   : > { %v1828_v57 = vsel %vm562_vm2, %v1816_v25, 0.0 }
 0x67e   : > { %v1829_v0 = vadd.f32 %v1828_v57, %v1827_v7 }
 0x680   : > { %v1831_v1 = vadd.f32 %v1830_v28, %v1829_v0 }
 0x682   : > { %v1833_v5 = vadd.f32 %v1832_v50, %v1831_v1 }
 0x684   : > { %1834 = vadd.xlane.f32.xlu0 %v1833_v5 }
 0x6e4   : > { %v1752_v43 = vpop.xlane.xlu1 %1751 }
 0x6e5   : > { %v1753_v51 = vrot.slane %v1752_v43, 4 }
 0x6e7   : > { %v1754_v23 = vadd.f32 %v1753_v51, %v1752_v43 }
 0x6e9   : > { %v1755_v13 = vrot.slane %v1754_v23, 2 }
 0x6eb   : > { %v1756_v47 = vadd.f32 %v1755_v13, %v1754_v23 }
 0x6ed   : > { %v1757_v63 = vrot.slane %v1756_v47, 1 }
 0x6ef   : > { %v1758_v18 = vadd.f32 %v1757_v63, %v1756_v47 }
 0x6f1   : > { %2097 = vpush %v1758_v18 }
 0x6f2   : > { %2099 = vpush %v1769_v53 }
 0x6f7   : > { %v1835_v19 = vpop.xlane.xlu0 %1834 }
 0x6f8   : > { %v1836_v4 = vrot.slane %v1835_v19, 4 }
 0x6fa   : > { %v1837_v26 = vadd.f32 %v1836_v4, %v1835_v19 }
 0x6fc   : > { %v1838_v58 = vrot.slane %v1837_v26, 2 }
 0x6fe   : > { %v1839_v55 = vadd.f32 %v1838_v58, %v1837_v26 }
 0x700   : > { %v1840_v38 = vrot.slane %v1839_v55, 1 }
 0x702   : > { %v1841_v49 = vadd.f32 %v1840_v38, %v1839_v55 }
 0x704   : > { %2101 = vpush %v1841_v49 }
 0x722   : > { %s2098_s23 = spop %2097 }
 0x723   : > { %s1843_s30 = ssub.f32 0.0, %s2098_s23  ;;  %s2100_s9 = spop %2099 }
 0x725   : > { %s1844_s11 = ssub.f32 %s1843_s30, %s2100_s9  ;;  %s2455_s30 = scalar_lea.hbm %s3874_s4, 16 }
 0x726   : > { %p2457_p9 = scmp.lt.s32.totalorder %s2455_s30, %s2451_s22 }
 0x728   : > { %p2458_p10 = por %p2457_p9, %p2456_p8 }
 0x72a   : > { %p2459_p11 = pnand %p2458_p10, %p2454_p7 }
 0x735   : > { %s2102_s13 = spop %2101 }
 0x736   : > { %s1845_s14 = ssub.f32 %s1844_s11, %s2102_s13 }
 0x738   : > { %v1846_v27 = vstv %s1845_s14 }
 0x739   : > { %1847 = vst [vmem:[%s231_s7] sm:$0xff] %v1846_v27 }
 0x73a   : > { %2462 = shalt.err (!%p2459_p11)
}
 0x73b   : > { %2103 = dma.vmem_to_hbm [thread:$0]  (%p2655_p5), %s1862_s10, 128, %s1864_s12, %s1849_s19  }
 0x73c PF: > { %p2109_p12 = scmp.ge.s32.totalorder %s2541_s18, 2  ;;  %s1875_s27 = sand.u32 1, %s2529_s15  }
 0x73d   : > { %s1876_s28 = scalar_lea.sflag [#allocation5], %s1875_s27 }
 0x73e   : > { %p2106_p13 = pnand %p2109_p12, %p2659_p6 }
 0x740   : > { %p2107_p0 = pneg %p2106_p13 }
 0x742   : > { %2524 = dma.done.wait (%p2107_p0), %s1876_s28, 128  }
 0x743   : > { %2526 = vsyncadd (%p2107_p0), %s1876_s28, 4294967168  ;;  %p14_p1 = scmp.ge.s32.totalorder %s2642_s21, 4   ;;  %s3962_s15 = smov %s2533_s16 }
 0x744   : > { %s3963_s16 = smov %s2537_s17  ;;  %s3964_s17 = smov %s2653_s24 }
 0x745   : > { %s3965_s18 = smov %s2642_s21  ;;  %16 = sbr.rel (!%p14_p1) target bundleno = 3 (0x3), region = 102 }
 0x74a   :  { %1882 = vsyncpa [#allocation5], 1 }
 0x74b   :  { %1884 = vsyncpa [#allocation5 + $0x1], 1 }

</bundles_post_ra>
